<compile_context>
chip_gen: v5e
topology: v5e:2x2
jax: 0.10.0
libtpu: 0.0.40
codegen_flags: <defaults>
</compile_context>

<pallas_src>
import functools

import jax
import jax.numpy as jnp
import numpy as np
from jax.experimental import pallas as pl
from jax.experimental.pallas import tpu as pltpu


def _make_shift_masks(D, H, W):
    """(27, 1, 1, D*H*W) float32 validity masks, one per (dx,dy,dz) shift.

    mask[k, 0, 0, x*H*W + y*W + z] == 1.0 iff the padded-volume sample
    (x+dx, y+dy, z+dz) (k = dx*9 + dy*3 + dz, offsets in {0,1,2}) lands in
    the interior; the zeros encode exactly F.pad's zero halo.
    """
    xs, ys, zs = np.meshgrid(np.arange(D), np.arange(H), np.arange(W),
                             indexing="ij")
    xs, ys, zs = xs.ravel(), ys.ravel(), zs.ravel()
    masks = np.zeros((27, D * H * W), np.float32)
    k = 0
    for ddx in (-1, 0, 1):
        for ddy in (-1, 0, 1):
            for ddz in (-1, 0, 1):
                valid = ((xs + ddx >= 0) & (xs + ddx < D) &
                         (ys + ddy >= 0) & (ys + ddy < H) &
                         (zs + ddz >= 0) & (zs + ddz < W))
                masks[k] = valid.astype(np.float32)
                k += 1
    return masks.reshape(27, 1, 1, D * H * W)


def _gen_prep_kernel(xf_ref, c_ref, mask_ref, out_ref, cat_s, *, H, W, padl):
    """Fused broadcast + channel concat + (implicit) zero-pad + 27-shift im2col.

    xf_ref:   (B, Cx, D*H*W)   x with spatial dims flattened (lane-dense)
    c_ref:    (B, Cc, 1)       broadcast source (mirrors c.view(B,Cc,1,1,1))
    mask_ref: (27, 1, 1, D*H*W) per-shift validity masks (encode F.pad halo)
    out_ref:  (27, B, Cx+Cc, D*H*W)
    cat_s:    VMEM scratch (B, Cx+Cc, D*H*W + 2*padl), lane-padded concat row
    """
    B, Cx, DHW = xf_ref.shape
    Cc = c_ref.shape[1]

    # Assemble the concatenated row [x-channels | broadcast(c)-channels] into
    # a lane-padded scratch: cat_s[b, ch, padl + f] = cat[b, ch, f]; lanes
    # outside [padl, padl + DHW) stay zero (stand-ins for the pad halo).
    # Scratch is ~3 KB, so this memset + masked interior write is negligible.
    cat_s[...] = jnp.zeros(cat_s.shape, cat_s.dtype)
    cat_s[:, :Cx, padl:padl + DHW] = xf_ref[...]
    cat_s[:, Cx:, padl:padl + DHW] = jnp.broadcast_to(c_ref[...], (B, Cc, DHW))

    # 27 statically unrolled shifts.  For shift (dx,dy,dz) = (ddx+1,ddy+1,ddz+1)
    # the shifted volume at flat voxel f is cat[f + s] (s = ddx*H*W+ddy*W+ddz)
    # when the shifted coordinate is interior, else 0 -- i.e. a static
    # lane-offset slice times the precomputed 0/1 mask.  Each result is one
    # dense (B, C, DHW) slab store.
    k = 0
    for ddx in (-1, 0, 1):
        for ddy in (-1, 0, 1):
            for ddz in (-1, 0, 1):
                s = ddx * H * W + ddy * W + ddz
                win = cat_s[:, :, padl + s:padl + s + DHW]
                out_ref[k] = win * mask_ref[k]
                k += 1


@jax.jit
def generator_prep(x, c):
    """x: (B, Cx, D, H, W) float32   |   c: (B, Cc) float32.

    Returns shifted: (27, B, Cx+Cc, D, H, W) with
        shifted[dx*9 + dy*3 + dz] == padded[:, :, dx:dx+D, dy:dy+H, dz:dz+W]
    where `padded` is the broadcast + channel-concat + zero-pad tensor of the
    torch forward.  The per-voxel 3x3x3 patch of the original triple loop is
        patches[x*H*W + y*W + z, b, ch, dx, dy, dz]
          = shifted[dx*9 + dy*3 + dz, b, ch, x, y, z].
    """
    B, Cx, D, H, W = x.shape
    Cc = c.shape[1]
    C = Cx + Cc
    DHW = D * H * W
    padl = H * W + W + 1          # >= max |flat-index shift|
    ext = DHW + 2 * padl

    xf = x.reshape(B, Cx, DHW)    # wrapper-side flatten: layout plumbing only
    c3 = c.reshape(B, Cc, 1)      # mirrors c.view(B, Cc, 1, 1, 1)
    masks = jnp.asarray(_make_shift_masks(D, H, W), dtype=x.dtype)

    kernel = functools.partial(_gen_prep_kernel, H=H, W=W, padl=padl)

    shifted_flat = pl.pallas_call(
        kernel,
        grid=(1,),
        in_specs=[
            pl.BlockSpec((B, Cx, DHW), lambda i: (0, 0, 0)),
            pl.BlockSpec((B, Cc, 1), lambda i: (0, 0, 0)),
            pl.BlockSpec((27, 1, 1, DHW), lambda i: (0, 0, 0, 0)),
        ],
        out_specs=pl.BlockSpec((27, B, C, DHW), lambda i: (0, 0, 0, 0)),
        out_shape=jax.ShapeDtypeStruct((27, B, C, DHW), x.dtype),
        scratch_shapes=[pltpu.VMEM((B, C, ext), x.dtype)],
        compiler_params=pltpu.CompilerParams(
            dimension_semantics=("arbitrary",)),
    )(xf, c3, masks)

    # Recover the canonical 6-D shifted-volume view (pure metadata reshape,
    # done outside the kernel hot path).
    return shifted_flat.reshape(27, B, C, D, H, W)


if __name__ == "__main__":
    key = jax.random.PRNGKey(0)
    kx, kc = jax.random.split(key)
    # small shapes consistent with the forward: x is a 5-D volume, c a code
    B, Cx, Cc, D, H, W = 2, 4, 3, 4, 4, 4
    C = Cx + Cc
    x = jax.random.normal(kx, (B, Cx, D, H, W), dtype=jnp.float32)
    c = jax.random.normal(kc, (B, Cc), dtype=jnp.float32)

    shifted = generator_prep(x, c)
    shifted = jax.block_until_ready(shifted)

    # ---- pure-JAX references mirroring the torch ops -----------------------
    cb = jnp.broadcast_to(c[:, :, None, None, None], (B, Cc, D, H, W))
    cat = jnp.concatenate([x, cb], axis=1)
    pad_ref = jnp.pad(cat, ((0, 0), (0, 0), (1, 1), (1, 1), (1, 1)))

    shift_ref = jnp.stack([pad_ref[:, :, dx:dx + D, dy:dy + H, dz:dz + W]
                           for dx in range(3)
                           for dy in range(3)
                           for dz in range(3)])
    assert jnp.allclose(shifted, shift_ref, atol=1e-6), "shifted volumes mismatch"

    # Canonical per-voxel patches (exact torch triple-loop order) recovered
    # from the lane-dense kernel output by pure reshapes/transposes -- test
    # glue proving the forward-pass patch semantics are preserved.
    patches = jnp.transpose(
        shifted.reshape(3, 3, 3, B, C, D, H, W),
        (5, 6, 7, 3, 4, 0, 1, 2)).reshape(D * H * W, B, C, 3, 3, 3)
    pats = []
    for X in range(1, pad_ref.shape[2] - 1):
        for Y in range(1, pad_ref.shape[3] - 1):
            for Z in range(1, pad_ref.shape[4] - 1):
                pats.append(pad_ref[:, :, X - 1:X + 2, Y - 1:Y + 2, Z - 1:Z + 2])
    patch_loop_ref = jnp.stack(pats)
    assert jnp.allclose(patches, patch_loop_ref, atol=1e-6), "patch mismatch"

    print("KERNEL_OK")
</pallas_src>

<mosaic_0001>
module attributes {stable_mosaic.version = 11 : i64} {
  func.func @_gen_prep_kernel(%arg0: i32, %arg1: memref<2x4x64xf32, #tpu.memory_space<vmem>>, %arg2: memref<2x3x1xf32, #tpu.memory_space<vmem>>, %arg3: memref<27x1x1x64xf32, #tpu.memory_space<vmem>>, %arg4: memref<27x2x7x64xf32, #tpu.memory_space<vmem>>, %arg5: memref<2x7x106xf32, #tpu.memory_space<vmem>>) attributes {dimension_semantics = [#tpu.dimension_semantics<arbitrary>], iteration_bounds = array<i64: 1>, scalar_prefetch = 0 : i64, scratch_operands = 1 : i64, tpu.core_type = #tpu.core_type<tc>, window_params = [{pipeline_mode = #tpu.pipeline_mode<synchronous>, transform_indices = @transform_0, window_bounds = array<i64: 2, 4, 64>}, {pipeline_mode = #tpu.pipeline_mode<synchronous>, transform_indices = @transform_1, window_bounds = array<i64: 2, 3, 1>}, {pipeline_mode = #tpu.pipeline_mode<synchronous>, transform_indices = @transform_2, window_bounds = array<i64: 27, 1, 1, 64>}, {pipeline_mode = #tpu.pipeline_mode<synchronous>, transform_indices = @transform_3, window_bounds = array<i64: 27, 2, 7, 64>}]} {
    %cst = arith.constant 0.000000e+00 : f32
    %0 = vector.broadcast %cst : f32 to vector<2x7x106xf32>
    %c0 = arith.constant 0 : index
    %c0_0 = arith.constant 0 : index
    %c0_1 = arith.constant 0 : index
    %1 = vector.load %arg5[%c0, %c0_0, %c0_1] : memref<2x7x106xf32, #tpu.memory_space<vmem>>, vector<2x7x106xf32>
    tpu.vector_store %arg5[%c0, %c0_0, %c0_1], %0 {strides = array<i32>} : memref<2x7x106xf32, #tpu.memory_space<vmem>>, vector<2x7x106xf32>,
    %c0_2 = arith.constant 0 : index
    %c0_3 = arith.constant 0 : index
    %c0_4 = arith.constant 0 : index
    %2 = vector.load %arg1[%c0_2, %c0_3, %c0_4] : memref<2x4x64xf32, #tpu.memory_space<vmem>>, vector<2x4x64xf32>
    %c0_5 = arith.constant 0 : index
    %c0_6 = arith.constant 0 : index
    %c21 = arith.constant 21 : index
    %3 = vector.load %arg5[%c0_5, %c0_6, %c21] : memref<2x7x106xf32, #tpu.memory_space<vmem>>, vector<2x4x64xf32>
    tpu.vector_store %arg5[%c0_5, %c0_6, %c21], %2 {strides = array<i32>} : memref<2x7x106xf32, #tpu.memory_space<vmem>>, vector<2x4x64xf32>,
    %c0_7 = arith.constant 0 : index
    %c0_8 = arith.constant 0 : index
    %c0_9 = arith.constant 0 : index
    %4 = vector.load %arg2[%c0_7, %c0_8, %c0_9] : memref<2x3x1xf32, #tpu.memory_space<vmem>>, vector<2x3x1xf32>
    %5 = vector.shape_cast %4 : vector<2x3x1xf32> to vector<2x3x1xf32>
    %6 = vector.broadcast %5 : vector<2x3x1xf32> to vector<2x3x64xf32>
    %c0_10 = arith.constant 0 : index
    %c4 = arith.constant 4 : index
    %c21_11 = arith.constant 21 : index
    %7 = vector.load %arg5[%c0_10, %c4, %c21_11] : memref<2x7x106xf32, #tpu.memory_space<vmem>>, vector<2x3x64xf32>
    tpu.vector_store %arg5[%c0_10, %c4, %c21_11], %6 {strides = array<i32>} : memref<2x7x106xf32, #tpu.memory_space<vmem>>, vector<2x3x64xf32>,
    %c0_12 = arith.constant 0 : index
    %c0_13 = arith.constant 0 : index
    %c0_14 = arith.constant 0 : index
    %8 = vector.load %arg5[%c0_12, %c0_13, %c0_14] : memref<2x7x106xf32, #tpu.memory_space<vmem>>, vector<2x7x64xf32>
    %c0_15 = arith.constant 0 : index
    %c0_16 = arith.constant 0 : index
    %c0_17 = arith.constant 0 : index
    %c0_18 = arith.constant 0 : index
    %9 = vector.load %arg3[%c0_15, %c0_16, %c0_17, %c0_18] : memref<27x1x1x64xf32, #tpu.memory_space<vmem>>, vector<1x1x1x64xf32>
    %10 = vector.shape_cast %9 : vector<1x1x1x64xf32> to vector<1x1x64xf32>
    %11 = vector.broadcast %10 : vector<1x1x64xf32> to vector<2x7x64xf32>
    %12 = arith.mulf %8, %11 : vector<2x7x64xf32>
    %c0_19 = arith.constant 0 : index
    %c0_20 = arith.constant 0 : index
    %c0_21 = arith.constant 0 : index
    %c0_22 = arith.constant 0 : index
    %13 = vector.load %arg4[%c0_19, %c0_20, %c0_21, %c0_22] : memref<27x2x7x64xf32, #tpu.memory_space<vmem>>, vector<1x2x7x64xf32>
    %14 = vector.shape_cast %13 : vector<1x2x7x64xf32> to vector<2x7x64xf32>
    %15 = vector.shape_cast %12 : vector<2x7x64xf32> to vector<1x2x7x64xf32>
    tpu.vector_store %arg4[%c0_19, %c0_20, %c0_21, %c0_22], %15 {strides = array<i32>} : memref<27x2x7x64xf32, #tpu.memory_space<vmem>>, vector<1x2x7x64xf32>,
    %c0_23 = arith.constant 0 : index
    %c0_24 = arith.constant 0 : index
    %c1 = arith.constant 1 : index
    %16 = vector.load %arg5[%c0_23, %c0_24, %c1] : memref<2x7x106xf32, #tpu.memory_space<vmem>>, vector<2x7x64xf32>
    %c1_25 = arith.constant 1 : index
    %c0_26 = arith.constant 0 : index
    %c0_27 = arith.constant 0 : index
    %c0_28 = arith.constant 0 : index
    %17 = vector.load %arg3[%c1_25, %c0_26, %c0_27, %c0_28] : memref<27x1x1x64xf32, #tpu.memory_space<vmem>>, vector<1x1x1x64xf32>
    %18 = vector.shape_cast %17 : vector<1x1x1x64xf32> to vector<1x1x64xf32>
    %19 = vector.broadcast %18 : vector<1x1x64xf32> to vector<2x7x64xf32>
    %20 = arith.mulf %16, %19 : vector<2x7x64xf32>
    %c1_29 = arith.constant 1 : index
    %c0_30 = arith.constant 0 : index
    %c0_31 = arith.constant 0 : index
    %c0_32 = arith.constant 0 : index
    %21 = vector.load %arg4[%c1_29, %c0_30, %c0_31, %c0_32] : memref<27x2x7x64xf32, #tpu.memory_space<vmem>>, vector<1x2x7x64xf32>
    %22 = vector.shape_cast %21 : vector<1x2x7x64xf32> to vector<2x7x64xf32>
    %23 = vector.shape_cast %20 : vector<2x7x64xf32> to vector<1x2x7x64xf32>
    tpu.vector_store %arg4[%c1_29, %c0_30, %c0_31, %c0_32], %23 {strides = array<i32>} : memref<27x2x7x64xf32, #tpu.memory_space<vmem>>, vector<1x2x7x64xf32>,
    %c0_33 = arith.constant 0 : index
    %c0_34 = arith.constant 0 : index
    %c2 = arith.constant 2 : index
    %24 = vector.load %arg5[%c0_33, %c0_34, %c2] : memref<2x7x106xf32, #tpu.memory_space<vmem>>, vector<2x7x64xf32>
    %c2_35 = arith.constant 2 : index
    %c0_36 = arith.constant 0 : index
    %c0_37 = arith.constant 0 : index
    %c0_38 = arith.constant 0 : index
    %25 = vector.load %arg3[%c2_35, %c0_36, %c0_37, %c0_38] : memref<27x1x1x64xf32, #tpu.memory_space<vmem>>, vector<1x1x1x64xf32>
    %26 = vector.shape_cast %25 : vector<1x1x1x64xf32> to vector<1x1x64xf32>
    %27 = vector.broadcast %26 : vector<1x1x64xf32> to vector<2x7x64xf32>
    %28 = arith.mulf %24, %27 : vector<2x7x64xf32>
    %c2_39 = arith.constant 2 : index
    %c0_40 = arith.constant 0 : index
    %c0_41 = arith.constant 0 : index
    %c0_42 = arith.constant 0 : index
    %29 = vector.load %arg4[%c2_39, %c0_40, %c0_41, %c0_42] : memref<27x2x7x64xf32, #tpu.memory_space<vmem>>, vector<1x2x7x64xf32>
    %30 = vector.shape_cast %29 : vector<1x2x7x64xf32> to vector<2x7x64xf32>
    %31 = vector.shape_cast %28 : vector<2x7x64xf32> to vector<1x2x7x64xf32>
    tpu.vector_store %arg4[%c2_39, %c0_40, %c0_41, %c0_42], %31 {strides = array<i32>} : memref<27x2x7x64xf32, #tpu.memory_space<vmem>>, vector<1x2x7x64xf32>,
    %c0_43 = arith.constant 0 : index
    %c0_44 = arith.constant 0 : index
    %c4_45 = arith.constant 4 : index
    %32 = vector.load %arg5[%c0_43, %c0_44, %c4_45] : memref<2x7x106xf32, #tpu.memory_space<vmem>>, vector<2x7x64xf32>
    %c3 = arith.constant 3 : index
    %c0_46 = arith.constant 0 : index
    %c0_47 = arith.constant 0 : index
    %c0_48 = arith.constant 0 : index
    %33 = vector.load %arg3[%c3, %c0_46, %c0_47, %c0_48] : memref<27x1x1x64xf32, #tpu.memory_space<vmem>>, vector<1x1x1x64xf32>
    %34 = vector.shape_cast %33 : vector<1x1x1x64xf32> to vector<1x1x64xf32>
    %35 = vector.broadcast %34 : vector<1x1x64xf32> to vector<2x7x64xf32>
    %36 = arith.mulf %32, %35 : vector<2x7x64xf32>
    %c3_49 = arith.constant 3 : index
    %c0_50 = arith.constant 0 : index
    %c0_51 = arith.constant 0 : index
    %c0_52 = arith.constant 0 : index
    %37 = vector.load %arg4[%c3_49, %c0_50, %c0_51, %c0_52] : memref<27x2x7x64xf32, #tpu.memory_space<vmem>>, vector<1x2x7x64xf32>
    %38 = vector.shape_cast %37 : vector<1x2x7x64xf32> to vector<2x7x64xf32>
    %39 = vector.shape_cast %36 : vector<2x7x64xf32> to vector<1x2x7x64xf32>
    tpu.vector_store %arg4[%c3_49, %c0_50, %c0_51, %c0_52], %39 {strides = array<i32>} : memref<27x2x7x64xf32, #tpu.memory_space<vmem>>, vector<1x2x7x64xf32>,
    %c0_53 = arith.constant 0 : index
    %c0_54 = arith.constant 0 : index
    %c5 = arith.constant 5 : index
    %40 = vector.load %arg5[%c0_53, %c0_54, %c5] : memref<2x7x106xf32, #tpu.memory_space<vmem>>, vector<2x7x64xf32>
    %c4_55 = arith.constant 4 : index
    %c0_56 = arith.constant 0 : index
    %c0_57 = arith.constant 0 : index
    %c0_58 = arith.constant 0 : index
    %41 = vector.load %arg3[%c4_55, %c0_56, %c0_57, %c0_58] : memref<27x1x1x64xf32, #tpu.memory_space<vmem>>, vector<1x1x1x64xf32>
    %42 = vector.shape_cast %41 : vector<1x1x1x64xf32> to vector<1x1x64xf32>
    %43 = vector.broadcast %42 : vector<1x1x64xf32> to vector<2x7x64xf32>
    %44 = arith.mulf %40, %43 : vector<2x7x64xf32>
    %c4_59 = arith.constant 4 : index
    %c0_60 = arith.constant 0 : index
    %c0_61 = arith.constant 0 : index
    %c0_62 = arith.constant 0 : index
    %45 = vector.load %arg4[%c4_59, %c0_60, %c0_61, %c0_62] : memref<27x2x7x64xf32, #tpu.memory_space<vmem>>, vector<1x2x7x64xf32>
    %46 = vector.shape_cast %45 : vector<1x2x7x64xf32> to vector<2x7x64xf32>
    %47 = vector.shape_cast %44 : vector<2x7x64xf32> to vector<1x2x7x64xf32>
    tpu.vector_store %arg4[%c4_59, %c0_60, %c0_61, %c0_62], %47 {strides = array<i32>} : memref<27x2x7x64xf32, #tpu.memory_space<vmem>>, vector<1x2x7x64xf32>,
    %c0_63 = arith.constant 0 : index
    %c0_64 = arith.constant 0 : index
    %c6 = arith.constant 6 : index
    %48 = vector.load %arg5[%c0_63, %c0_64, %c6] : memref<2x7x106xf32, #tpu.memory_space<vmem>>, vector<2x7x64xf32>
    %c5_65 = arith.constant 5 : index
    %c0_66 = arith.constant 0 : index
    %c0_67 = arith.constant 0 : index
    %c0_68 = arith.constant 0 : index
    %49 = vector.load %arg3[%c5_65, %c0_66, %c0_67, %c0_68] : memref<27x1x1x64xf32, #tpu.memory_space<vmem>>, vector<1x1x1x64xf32>
    %50 = vector.shape_cast %49 : vector<1x1x1x64xf32> to vector<1x1x64xf32>
    %51 = vector.broadcast %50 : vector<1x1x64xf32> to vector<2x7x64xf32>
    %52 = arith.mulf %48, %51 : vector<2x7x64xf32>
    %c5_69 = arith.constant 5 : index
    %c0_70 = arith.constant 0 : index
    %c0_71 = arith.constant 0 : index
    %c0_72 = arith.constant 0 : index
    %53 = vector.load %arg4[%c5_69, %c0_70, %c0_71, %c0_72] : memref<27x2x7x64xf32, #tpu.memory_space<vmem>>, vector<1x2x7x64xf32>
    %54 = vector.shape_cast %53 : vector<1x2x7x64xf32> to vector<2x7x64xf32>
    %55 = vector.shape_cast %52 : vector<2x7x64xf32> to vector<1x2x7x64xf32>
    tpu.vector_store %arg4[%c5_69, %c0_70, %c0_71, %c0_72], %55 {strides = array<i32>} : memref<27x2x7x64xf32, #tpu.memory_space<vmem>>, vector<1x2x7x64xf32>,
    %c0_73 = arith.constant 0 : index
    %c0_74 = arith.constant 0 : index
    %c8 = arith.constant 8 : index
    %56 = vector.load %arg5[%c0_73, %c0_74, %c8] : memref<2x7x106xf32, #tpu.memory_space<vmem>>, vector<2x7x64xf32>
    %c6_75 = arith.constant 6 : index
    %c0_76 = arith.constant 0 : index
    %c0_77 = arith.constant 0 : index
    %c0_78 = arith.constant 0 : index
    %57 = vector.load %arg3[%c6_75, %c0_76, %c0_77, %c0_78] : memref<27x1x1x64xf32, #tpu.memory_space<vmem>>, vector<1x1x1x64xf32>
    %58 = vector.shape_cast %57 : vector<1x1x1x64xf32> to vector<1x1x64xf32>
    %59 = vector.broadcast %58 : vector<1x1x64xf32> to vector<2x7x64xf32>
    %60 = arith.mulf %56, %59 : vector<2x7x64xf32>
    %c6_79 = arith.constant 6 : index
    %c0_80 = arith.constant 0 : index
    %c0_81 = arith.constant 0 : index
    %c0_82 = arith.constant 0 : index
    %61 = vector.load %arg4[%c6_79, %c0_80, %c0_81, %c0_82] : memref<27x2x7x64xf32, #tpu.memory_space<vmem>>, vector<1x2x7x64xf32>
    %62 = vector.shape_cast %61 : vector<1x2x7x64xf32> to vector<2x7x64xf32>
    %63 = vector.shape_cast %60 : vector<2x7x64xf32> to vector<1x2x7x64xf32>
    tpu.vector_store %arg4[%c6_79, %c0_80, %c0_81, %c0_82], %63 {strides = array<i32>} : memref<27x2x7x64xf32, #tpu.memory_space<vmem>>, vector<1x2x7x64xf32>,
    %c0_83 = arith.constant 0 : index
    %c0_84 = arith.constant 0 : index
    %c9 = arith.constant 9 : index
    %64 = vector.load %arg5[%c0_83, %c0_84, %c9] : memref<2x7x106xf32, #tpu.memory_space<vmem>>, vector<2x7x64xf32>
    %c7 = arith.constant 7 : index
    %c0_85 = arith.constant 0 : index
    %c0_86 = arith.constant 0 : index
    %c0_87 = arith.constant 0 : index
    %65 = vector.load %arg3[%c7, %c0_85, %c0_86, %c0_87] : memref<27x1x1x64xf32, #tpu.memory_space<vmem>>, vector<1x1x1x64xf32>
    %66 = vector.shape_cast %65 : vector<1x1x1x64xf32> to vector<1x1x64xf32>
    %67 = vector.broadcast %66 : vector<1x1x64xf32> to vector<2x7x64xf32>
    %68 = arith.mulf %64, %67 : vector<2x7x64xf32>
    %c7_88 = arith.constant 7 : index
    %c0_89 = arith.constant 0 : index
    %c0_90 = arith.constant 0 : index
    %c0_91 = arith.constant 0 : index
    %69 = vector.load %arg4[%c7_88, %c0_89, %c0_90, %c0_91] : memref<27x2x7x64xf32, #tpu.memory_space<vmem>>, vector<1x2x7x64xf32>
    %70 = vector.shape_cast %69 : vector<1x2x7x64xf32> to vector<2x7x64xf32>
    %71 = vector.shape_cast %68 : vector<2x7x64xf32> to vector<1x2x7x64xf32>
    tpu.vector_store %arg4[%c7_88, %c0_89, %c0_90, %c0_91], %71 {strides = array<i32>} : memref<27x2x7x64xf32, #tpu.memory_space<vmem>>, vector<1x2x7x64xf32>,
    %c0_92 = arith.constant 0 : index
    %c0_93 = arith.constant 0 : index
    %c10 = arith.constant 10 : index
    %72 = vector.load %arg5[%c0_92, %c0_93, %c10] : memref<2x7x106xf32, #tpu.memory_space<vmem>>, vector<2x7x64xf32>
    %c8_94 = arith.constant 8 : index
    %c0_95 = arith.constant 0 : index
    %c0_96 = arith.constant 0 : index
    %c0_97 = arith.constant 0 : index
    %73 = vector.load %arg3[%c8_94, %c0_95, %c0_96, %c0_97] : memref<27x1x1x64xf32, #tpu.memory_space<vmem>>, vector<1x1x1x64xf32>
    %74 = vector.shape_cast %73 : vector<1x1x1x64xf32> to vector<1x1x64xf32>
    %75 = vector.broadcast %74 : vector<1x1x64xf32> to vector<2x7x64xf32>
    %76 = arith.mulf %72, %75 : vector<2x7x64xf32>
    %c8_98 = arith.constant 8 : index
    %c0_99 = arith.constant 0 : index
    %c0_100 = arith.constant 0 : index
    %c0_101 = arith.constant 0 : index
    %77 = vector.load %arg4[%c8_98, %c0_99, %c0_100, %c0_101] : memref<27x2x7x64xf32, #tpu.memory_space<vmem>>, vector<1x2x7x64xf32>
    %78 = vector.shape_cast %77 : vector<1x2x7x64xf32> to vector<2x7x64xf32>
    %79 = vector.shape_cast %76 : vector<2x7x64xf32> to vector<1x2x7x64xf32>
    tpu.vector_store %arg4[%c8_98, %c0_99, %c0_100, %c0_101], %79 {strides = array<i32>} : memref<27x2x7x64xf32, #tpu.memory_space<vmem>>, vector<1x2x7x64xf32>,
    %c0_102 = arith.constant 0 : index
    %c0_103 = arith.constant 0 : index
    %c16 = arith.constant 16 : index
    %80 = vector.load %arg5[%c0_102, %c0_103, %c16] : memref<2x7x106xf32, #tpu.memory_space<vmem>>, vector<2x7x64xf32>
    %c9_104 = arith.constant 9 : index
    %c0_105 = arith.constant 0 : index
    %c0_106 = arith.constant 0 : index
    %c0_107 = arith.constant 0 : index
    %81 = vector.load %arg3[%c9_104, %c0_105, %c0_106, %c0_107] : memref<27x1x1x64xf32, #tpu.memory_space<vmem>>, vector<1x1x1x64xf32>
    %82 = vector.shape_cast %81 : vector<1x1x1x64xf32> to vector<1x1x64xf32>
    %83 = vector.broadcast %82 : vector<1x1x64xf32> to vector<2x7x64xf32>
    %84 = arith.mulf %80, %83 : vector<2x7x64xf32>
    %c9_108 = arith.constant 9 : index
    %c0_109 = arith.constant 0 : index
    %c0_110 = arith.constant 0 : index
    %c0_111 = arith.constant 0 : index
    %85 = vector.load %arg4[%c9_108, %c0_109, %c0_110, %c0_111] : memref<27x2x7x64xf32, #tpu.memory_space<vmem>>, vector<1x2x7x64xf32>
    %86 = vector.shape_cast %85 : vector<1x2x7x64xf32> to vector<2x7x64xf32>
    %87 = vector.shape_cast %84 : vector<2x7x64xf32> to vector<1x2x7x64xf32>
    tpu.vector_store %arg4[%c9_108, %c0_109, %c0_110, %c0_111], %87 {strides = array<i32>} : memref<27x2x7x64xf32, #tpu.memory_space<vmem>>, vector<1x2x7x64xf32>,
    %c0_112 = arith.constant 0 : index
    %c0_113 = arith.constant 0 : index
    %c17 = arith.constant 17 : index
    %88 = vector.load %arg5[%c0_112, %c0_113, %c17] : memref<2x7x106xf32, #tpu.memory_space<vmem>>, vector<2x7x64xf32>
    %c10_114 = arith.constant 10 : index
    %c0_115 = arith.constant 0 : index
    %c0_116 = arith.constant 0 : index
    %c0_117 = arith.constant 0 : index
    %89 = vector.load %arg3[%c10_114, %c0_115, %c0_116, %c0_117] : memref<27x1x1x64xf32, #tpu.memory_space<vmem>>, vector<1x1x1x64xf32>
    %90 = vector.shape_cast %89 : vector<1x1x1x64xf32> to vector<1x1x64xf32>
    %91 = vector.broadcast %90 : vector<1x1x64xf32> to vector<2x7x64xf32>
    %92 = arith.mulf %88, %91 : vector<2x7x64xf32>
    %c10_118 = arith.constant 10 : index
    %c0_119 = arith.constant 0 : index
    %c0_120 = arith.constant 0 : index
    %c0_121 = arith.constant 0 : index
    %93 = vector.load %arg4[%c10_118, %c0_119, %c0_120, %c0_121] : memref<27x2x7x64xf32, #tpu.memory_space<vmem>>, vector<1x2x7x64xf32>
    %94 = vector.shape_cast %93 : vector<1x2x7x64xf32> to vector<2x7x64xf32>
    %95 = vector.shape_cast %92 : vector<2x7x64xf32> to vector<1x2x7x64xf32>
    tpu.vector_store %arg4[%c10_118, %c0_119, %c0_120, %c0_121], %95 {strides = array<i32>} : memref<27x2x7x64xf32, #tpu.memory_space<vmem>>, vector<1x2x7x64xf32>,
    %c0_122 = arith.constant 0 : index
    %c0_123 = arith.constant 0 : index
    %c18 = arith.constant 18 : index
    %96 = vector.load %arg5[%c0_122, %c0_123, %c18] : memref<2x7x106xf32, #tpu.memory_space<vmem>>, vector<2x7x64xf32>
    %c11 = arith.constant 11 : index
    %c0_124 = arith.constant 0 : index
    %c0_125 = arith.constant 0 : index
    %c0_126 = arith.constant 0 : index
    %97 = vector.load %arg3[%c11, %c0_124, %c0_125, %c0_126] : memref<27x1x1x64xf32, #tpu.memory_space<vmem>>, vector<1x1x1x64xf32>
    %98 = vector.shape_cast %97 : vector<1x1x1x64xf32> to vector<1x1x64xf32>
    %99 = vector.broadcast %98 : vector<1x1x64xf32> to vector<2x7x64xf32>
    %100 = arith.mulf %96, %99 : vector<2x7x64xf32>
    %c11_127 = arith.constant 11 : index
    %c0_128 = arith.constant 0 : index
    %c0_129 = arith.constant 0 : index
    %c0_130 = arith.constant 0 : index
    %101 = vector.load %arg4[%c11_127, %c0_128, %c0_129, %c0_130] : memref<27x2x7x64xf32, #tpu.memory_space<vmem>>, vector<1x2x7x64xf32>
    %102 = vector.shape_cast %101 : vector<1x2x7x64xf32> to vector<2x7x64xf32>
    %103 = vector.shape_cast %100 : vector<2x7x64xf32> to vector<1x2x7x64xf32>
    tpu.vector_store %arg4[%c11_127, %c0_128, %c0_129, %c0_130], %103 {strides = array<i32>} : memref<27x2x7x64xf32, #tpu.memory_space<vmem>>, vector<1x2x7x64xf32>,
    %c0_131 = arith.constant 0 : index
    %c0_132 = arith.constant 0 : index
    %c20 = arith.constant 20 : index
    %104 = vector.load %arg5[%c0_131, %c0_132, %c20] : memref<2x7x106xf32, #tpu.memory_space<vmem>>, vector<2x7x64xf32>
    %c12 = arith.constant 12 : index
    %c0_133 = arith.constant 0 : index
    %c0_134 = arith.constant 0 : index
    %c0_135 = arith.constant 0 : index
    %105 = vector.load %arg3[%c12, %c0_133, %c0_134, %c0_135] : memref<27x1x1x64xf32, #tpu.memory_space<vmem>>, vector<1x1x1x64xf32>
    %106 = vector.shape_cast %105 : vector<1x1x1x64xf32> to vector<1x1x64xf32>
    %107 = vector.broadcast %106 : vector<1x1x64xf32> to vector<2x7x64xf32>
    %108 = arith.mulf %104, %107 : vector<2x7x64xf32>
    %c12_136 = arith.constant 12 : index
    %c0_137 = arith.constant 0 : index
    %c0_138 = arith.constant 0 : index
    %c0_139 = arith.constant 0 : index
    %109 = vector.load %arg4[%c12_136, %c0_137, %c0_138, %c0_139] : memref<27x2x7x64xf32, #tpu.memory_space<vmem>>, vector<1x2x7x64xf32>
    %110 = vector.shape_cast %109 : vector<1x2x7x64xf32> to vector<2x7x64xf32>
    %111 = vector.shape_cast %108 : vector<2x7x64xf32> to vector<1x2x7x64xf32>
    tpu.vector_store %arg4[%c12_136, %c0_137, %c0_138, %c0_139], %111 {strides = array<i32>} : memref<27x2x7x64xf32, #tpu.memory_space<vmem>>, vector<1x2x7x64xf32>,
    %c0_140 = arith.constant 0 : index
    %c0_141 = arith.constant 0 : index
    %c21_142 = arith.constant 21 : index
    %112 = vector.load %arg5[%c0_140, %c0_141, %c21_142] : memref<2x7x106xf32, #tpu.memory_space<vmem>>, vector<2x7x64xf32>
    %c13 = arith.constant 13 : index
    %c0_143 = arith.constant 0 : index
    %c0_144 = arith.constant 0 : index
    %c0_145 = arith.constant 0 : index
    %113 = vector.load %arg3[%c13, %c0_143, %c0_144, %c0_145] : memref<27x1x1x64xf32, #tpu.memory_space<vmem>>, vector<1x1x1x64xf32>
    %114 = vector.shape_cast %113 : vector<1x1x1x64xf32> to vector<1x1x64xf32>
    %115 = vector.broadcast %114 : vector<1x1x64xf32> to vector<2x7x64xf32>
    %116 = arith.mulf %112, %115 : vector<2x7x64xf32>
    %c13_146 = arith.constant 13 : index
    %c0_147 = arith.constant 0 : index
    %c0_148 = arith.constant 0 : index
    %c0_149 = arith.constant 0 : index
    %117 = vector.load %arg4[%c13_146, %c0_147, %c0_148, %c0_149] : memref<27x2x7x64xf32, #tpu.memory_space<vmem>>, vector<1x2x7x64xf32>
    %118 = vector.shape_cast %117 : vector<1x2x7x64xf32> to vector<2x7x64xf32>
    %119 = vector.shape_cast %116 : vector<2x7x64xf32> to vector<1x2x7x64xf32>
    tpu.vector_store %arg4[%c13_146, %c0_147, %c0_148, %c0_149], %119 {strides = array<i32>} : memref<27x2x7x64xf32, #tpu.memory_space<vmem>>, vector<1x2x7x64xf32>,
    %c0_150 = arith.constant 0 : index
    %c0_151 = arith.constant 0 : index
    %c22 = arith.constant 22 : index
    %120 = vector.load %arg5[%c0_150, %c0_151, %c22] : memref<2x7x106xf32, #tpu.memory_space<vmem>>, vector<2x7x64xf32>
    %c14 = arith.constant 14 : index
    %c0_152 = arith.constant 0 : index
    %c0_153 = arith.constant 0 : index
    %c0_154 = arith.constant 0 : index
    %121 = vector.load %arg3[%c14, %c0_152, %c0_153, %c0_154] : memref<27x1x1x64xf32, #tpu.memory_space<vmem>>, vector<1x1x1x64xf32>
    %122 = vector.shape_cast %121 : vector<1x1x1x64xf32> to vector<1x1x64xf32>
    %123 = vector.broadcast %122 : vector<1x1x64xf32> to vector<2x7x64xf32>
    %124 = arith.mulf %120, %123 : vector<2x7x64xf32>
    %c14_155 = arith.constant 14 : index
    %c0_156 = arith.constant 0 : index
    %c0_157 = arith.constant 0 : index
    %c0_158 = arith.constant 0 : index
    %125 = vector.load %arg4[%c14_155, %c0_156, %c0_157, %c0_158] : memref<27x2x7x64xf32, #tpu.memory_space<vmem>>, vector<1x2x7x64xf32>
    %126 = vector.shape_cast %125 : vector<1x2x7x64xf32> to vector<2x7x64xf32>
    %127 = vector.shape_cast %124 : vector<2x7x64xf32> to vector<1x2x7x64xf32>
    tpu.vector_store %arg4[%c14_155, %c0_156, %c0_157, %c0_158], %127 {strides = array<i32>} : memref<27x2x7x64xf32, #tpu.memory_space<vmem>>, vector<1x2x7x64xf32>,
    %c0_159 = arith.constant 0 : index
    %c0_160 = arith.constant 0 : index
    %c24 = arith.constant 24 : index
    %128 = vector.load %arg5[%c0_159, %c0_160, %c24] : memref<2x7x106xf32, #tpu.memory_space<vmem>>, vector<2x7x64xf32>
    %c15 = arith.constant 15 : index
    %c0_161 = arith.constant 0 : index
    %c0_162 = arith.constant 0 : index
    %c0_163 = arith.constant 0 : index
    %129 = vector.load %arg3[%c15, %c0_161, %c0_162, %c0_163] : memref<27x1x1x64xf32, #tpu.memory_space<vmem>>, vector<1x1x1x64xf32>
    %130 = vector.shape_cast %129 : vector<1x1x1x64xf32> to vector<1x1x64xf32>
    %131 = vector.broadcast %130 : vector<1x1x64xf32> to vector<2x7x64xf32>
    %132 = arith.mulf %128, %131 : vector<2x7x64xf32>
    %c15_164 = arith.constant 15 : index
    %c0_165 = arith.constant 0 : index
    %c0_166 = arith.constant 0 : index
    %c0_167 = arith.constant 0 : index
    %133 = vector.load %arg4[%c15_164, %c0_165, %c0_166, %c0_167] : memref<27x2x7x64xf32, #tpu.memory_space<vmem>>, vector<1x2x7x64xf32>
    %134 = vector.shape_cast %133 : vector<1x2x7x64xf32> to vector<2x7x64xf32>
    %135 = vector.shape_cast %132 : vector<2x7x64xf32> to vector<1x2x7x64xf32>
    tpu.vector_store %arg4[%c15_164, %c0_165, %c0_166, %c0_167], %135 {strides = array<i32>} : memref<27x2x7x64xf32, #tpu.memory_space<vmem>>, vector<1x2x7x64xf32>,
    %c0_168 = arith.constant 0 : index
    %c0_169 = arith.constant 0 : index
    %c25 = arith.constant 25 : index
    %136 = vector.load %arg5[%c0_168, %c0_169, %c25] : memref<2x7x106xf32, #tpu.memory_space<vmem>>, vector<2x7x64xf32>
    %c16_170 = arith.constant 16 : index
    %c0_171 = arith.constant 0 : index
    %c0_172 = arith.constant 0 : index
    %c0_173 = arith.constant 0 : index
    %137 = vector.load %arg3[%c16_170, %c0_171, %c0_172, %c0_173] : memref<27x1x1x64xf32, #tpu.memory_space<vmem>>, vector<1x1x1x64xf32>
    %138 = vector.shape_cast %137 : vector<1x1x1x64xf32> to vector<1x1x64xf32>
    %139 = vector.broadcast %138 : vector<1x1x64xf32> to vector<2x7x64xf32>
    %140 = arith.mulf %136, %139 : vector<2x7x64xf32>
    %c16_174 = arith.constant 16 : index
    %c0_175 = arith.constant 0 : index
    %c0_176 = arith.constant 0 : index
    %c0_177 = arith.constant 0 : index
    %141 = vector.load %arg4[%c16_174, %c0_175, %c0_176, %c0_177] : memref<27x2x7x64xf32, #tpu.memory_space<vmem>>, vector<1x2x7x64xf32>
    %142 = vector.shape_cast %141 : vector<1x2x7x64xf32> to vector<2x7x64xf32>
    %143 = vector.shape_cast %140 : vector<2x7x64xf32> to vector<1x2x7x64xf32>
    tpu.vector_store %arg4[%c16_174, %c0_175, %c0_176, %c0_177], %143 {strides = array<i32>} : memref<27x2x7x64xf32, #tpu.memory_space<vmem>>, vector<1x2x7x64xf32>,
    %c0_178 = arith.constant 0 : index
    %c0_179 = arith.constant 0 : index
    %c26 = arith.constant 26 : index
    %144 = vector.load %arg5[%c0_178, %c0_179, %c26] : memref<2x7x106xf32, #tpu.memory_space<vmem>>, vector<2x7x64xf32>
    %c17_180 = arith.constant 17 : index
    %c0_181 = arith.constant 0 : index
    %c0_182 = arith.constant 0 : index
    %c0_183 = arith.constant 0 : index
    %145 = vector.load %arg3[%c17_180, %c0_181, %c0_182, %c0_183] : memref<27x1x1x64xf32, #tpu.memory_space<vmem>>, vector<1x1x1x64xf32>
    %146 = vector.shape_cast %145 : vector<1x1x1x64xf32> to vector<1x1x64xf32>
    %147 = vector.broadcast %146 : vector<1x1x64xf32> to vector<2x7x64xf32>
    %148 = arith.mulf %144, %147 : vector<2x7x64xf32>
    %c17_184 = arith.constant 17 : index
    %c0_185 = arith.constant 0 : index
    %c0_186 = arith.constant 0 : index
    %c0_187 = arith.constant 0 : index
    %149 = vector.load %arg4[%c17_184, %c0_185, %c0_186, %c0_187] : memref<27x2x7x64xf32, #tpu.memory_space<vmem>>, vector<1x2x7x64xf32>
    %150 = vector.shape_cast %149 : vector<1x2x7x64xf32> to vector<2x7x64xf32>
    %151 = vector.shape_cast %148 : vector<2x7x64xf32> to vector<1x2x7x64xf32>
    tpu.vector_store %arg4[%c17_184, %c0_185, %c0_186, %c0_187], %151 {strides = array<i32>} : memref<27x2x7x64xf32, #tpu.memory_space<vmem>>, vector<1x2x7x64xf32>,
    %c0_188 = arith.constant 0 : index
    %c0_189 = arith.constant 0 : index
    %c32 = arith.constant 32 : index
    %152 = vector.load %arg5[%c0_188, %c0_189, %c32] : memref<2x7x106xf32, #tpu.memory_space<vmem>>, vector<2x7x64xf32>
    %c18_190 = arith.constant 18 : index
    %c0_191 = arith.constant 0 : index
    %c0_192 = arith.constant 0 : index
    %c0_193 = arith.constant 0 : index
    %153 = vector.load %arg3[%c18_190, %c0_191, %c0_192, %c0_193] : memref<27x1x1x64xf32, #tpu.memory_space<vmem>>, vector<1x1x1x64xf32>
    %154 = vector.shape_cast %153 : vector<1x1x1x64xf32> to vector<1x1x64xf32>
    %155 = vector.broadcast %154 : vector<1x1x64xf32> to vector<2x7x64xf32>
    %156 = arith.mulf %152, %155 : vector<2x7x64xf32>
    %c18_194 = arith.constant 18 : index
    %c0_195 = arith.constant 0 : index
    %c0_196 = arith.constant 0 : index
    %c0_197 = arith.constant 0 : index
    %157 = vector.load %arg4[%c18_194, %c0_195, %c0_196, %c0_197] : memref<27x2x7x64xf32, #tpu.memory_space<vmem>>, vector<1x2x7x64xf32>
    %158 = vector.shape_cast %157 : vector<1x2x7x64xf32> to vector<2x7x64xf32>
    %159 = vector.shape_cast %156 : vector<2x7x64xf32> to vector<1x2x7x64xf32>
    tpu.vector_store %arg4[%c18_194, %c0_195, %c0_196, %c0_197], %159 {strides = array<i32>} : memref<27x2x7x64xf32, #tpu.memory_space<vmem>>, vector<1x2x7x64xf32>,
    %c0_198 = arith.constant 0 : index
    %c0_199 = arith.constant 0 : index
    %c33 = arith.constant 33 : index
    %160 = vector.load %arg5[%c0_198, %c0_199, %c33] : memref<2x7x106xf32, #tpu.memory_space<vmem>>, vector<2x7x64xf32>
    %c19 = arith.constant 19 : index
    %c0_200 = arith.constant 0 : index
    %c0_201 = arith.constant 0 : index
    %c0_202 = arith.constant 0 : index
    %161 = vector.load %arg3[%c19, %c0_200, %c0_201, %c0_202] : memref<27x1x1x64xf32, #tpu.memory_space<vmem>>, vector<1x1x1x64xf32>
    %162 = vector.shape_cast %161 : vector<1x1x1x64xf32> to vector<1x1x64xf32>
    %163 = vector.broadcast %162 : vector<1x1x64xf32> to vector<2x7x64xf32>
    %164 = arith.mulf %160, %163 : vector<2x7x64xf32>
    %c19_203 = arith.constant 19 : index
    %c0_204 = arith.constant 0 : index
    %c0_205 = arith.constant 0 : index
    %c0_206 = arith.constant 0 : index
    %165 = vector.load %arg4[%c19_203, %c0_204, %c0_205, %c0_206] : memref<27x2x7x64xf32, #tpu.memory_space<vmem>>, vector<1x2x7x64xf32>
    %166 = vector.shape_cast %165 : vector<1x2x7x64xf32> to vector<2x7x64xf32>
    %167 = vector.shape_cast %164 : vector<2x7x64xf32> to vector<1x2x7x64xf32>
    tpu.vector_store %arg4[%c19_203, %c0_204, %c0_205, %c0_206], %167 {strides = array<i32>} : memref<27x2x7x64xf32, #tpu.memory_space<vmem>>, vector<1x2x7x64xf32>,
    %c0_207 = arith.constant 0 : index
    %c0_208 = arith.constant 0 : index
    %c34 = arith.constant 34 : index
    %168 = vector.load %arg5[%c0_207, %c0_208, %c34] : memref<2x7x106xf32, #tpu.memory_space<vmem>>, vector<2x7x64xf32>
    %c20_209 = arith.constant 20 : index
    %c0_210 = arith.constant 0 : index
    %c0_211 = arith.constant 0 : index
    %c0_212 = arith.constant 0 : index
    %169 = vector.load %arg3[%c20_209, %c0_210, %c0_211, %c0_212] : memref<27x1x1x64xf32, #tpu.memory_space<vmem>>, vector<1x1x1x64xf32>
    %170 = vector.shape_cast %169 : vector<1x1x1x64xf32> to vector<1x1x64xf32>
    %171 = vector.broadcast %170 : vector<1x1x64xf32> to vector<2x7x64xf32>
    %172 = arith.mulf %168, %171 : vector<2x7x64xf32>
    %c20_213 = arith.constant 20 : index
    %c0_214 = arith.constant 0 : index
    %c0_215 = arith.constant 0 : index
    %c0_216 = arith.constant 0 : index
    %173 = vector.load %arg4[%c20_213, %c0_214, %c0_215, %c0_216] : memref<27x2x7x64xf32, #tpu.memory_space<vmem>>, vector<1x2x7x64xf32>
    %174 = vector.shape_cast %173 : vector<1x2x7x64xf32> to vector<2x7x64xf32>
    %175 = vector.shape_cast %172 : vector<2x7x64xf32> to vector<1x2x7x64xf32>
    tpu.vector_store %arg4[%c20_213, %c0_214, %c0_215, %c0_216], %175 {strides = array<i32>} : memref<27x2x7x64xf32, #tpu.memory_space<vmem>>, vector<1x2x7x64xf32>,
    %c0_217 = arith.constant 0 : index
    %c0_218 = arith.constant 0 : index
    %c36 = arith.constant 36 : index
    %176 = vector.load %arg5[%c0_217, %c0_218, %c36] : memref<2x7x106xf32, #tpu.memory_space<vmem>>, vector<2x7x64xf32>
    %c21_219 = arith.constant 21 : index
    %c0_220 = arith.constant 0 : index
    %c0_221 = arith.constant 0 : index
    %c0_222 = arith.constant 0 : index
    %177 = vector.load %arg3[%c21_219, %c0_220, %c0_221, %c0_222] : memref<27x1x1x64xf32, #tpu.memory_space<vmem>>, vector<1x1x1x64xf32>
    %178 = vector.shape_cast %177 : vector<1x1x1x64xf32> to vector<1x1x64xf32>
    %179 = vector.broadcast %178 : vector<1x1x64xf32> to vector<2x7x64xf32>
    %180 = arith.mulf %176, %179 : vector<2x7x64xf32>
    %c21_223 = arith.constant 21 : index
    %c0_224 = arith.constant 0 : index
    %c0_225 = arith.constant 0 : index
    %c0_226 = arith.constant 0 : index
    %181 = vector.load %arg4[%c21_223, %c0_224, %c0_225, %c0_226] : memref<27x2x7x64xf32, #tpu.memory_space<vmem>>, vector<1x2x7x64xf32>
    %182 = vector.shape_cast %181 : vector<1x2x7x64xf32> to vector<2x7x64xf32>
    %183 = vector.shape_cast %180 : vector<2x7x64xf32> to vector<1x2x7x64xf32>
    tpu.vector_store %arg4[%c21_223, %c0_224, %c0_225, %c0_226], %183 {strides = array<i32>} : memref<27x2x7x64xf32, #tpu.memory_space<vmem>>, vector<1x2x7x64xf32>,
    %c0_227 = arith.constant 0 : index
    %c0_228 = arith.constant 0 : index
    %c37 = arith.constant 37 : index
    %184 = vector.load %arg5[%c0_227, %c0_228, %c37] : memref<2x7x106xf32, #tpu.memory_space<vmem>>, vector<2x7x64xf32>
    %c22_229 = arith.constant 22 : index
    %c0_230 = arith.constant 0 : index
    %c0_231 = arith.constant 0 : index
    %c0_232 = arith.constant 0 : index
    %185 = vector.load %arg3[%c22_229, %c0_230, %c0_231, %c0_232] : memref<27x1x1x64xf32, #tpu.memory_space<vmem>>, vector<1x1x1x64xf32>
    %186 = vector.shape_cast %185 : vector<1x1x1x64xf32> to vector<1x1x64xf32>
    %187 = vector.broadcast %186 : vector<1x1x64xf32> to vector<2x7x64xf32>
    %188 = arith.mulf %184, %187 : vector<2x7x64xf32>
    %c22_233 = arith.constant 22 : index
    %c0_234 = arith.constant 0 : index
    %c0_235 = arith.constant 0 : index
    %c0_236 = arith.constant 0 : index
    %189 = vector.load %arg4[%c22_233, %c0_234, %c0_235, %c0_236] : memref<27x2x7x64xf32, #tpu.memory_space<vmem>>, vector<1x2x7x64xf32>
    %190 = vector.shape_cast %189 : vector<1x2x7x64xf32> to vector<2x7x64xf32>
    %191 = vector.shape_cast %188 : vector<2x7x64xf32> to vector<1x2x7x64xf32>
    tpu.vector_store %arg4[%c22_233, %c0_234, %c0_235, %c0_236], %191 {strides = array<i32>} : memref<27x2x7x64xf32, #tpu.memory_space<vmem>>, vector<1x2x7x64xf32>,
    %c0_237 = arith.constant 0 : index
    %c0_238 = arith.constant 0 : index
    %c38 = arith.constant 38 : index
    %192 = vector.load %arg5[%c0_237, %c0_238, %c38] : memref<2x7x106xf32, #tpu.memory_space<vmem>>, vector<2x7x64xf32>
    %c23 = arith.constant 23 : index
    %c0_239 = arith.constant 0 : index
    %c0_240 = arith.constant 0 : index
    %c0_241 = arith.constant 0 : index
    %193 = vector.load %arg3[%c23, %c0_239, %c0_240, %c0_241] : memref<27x1x1x64xf32, #tpu.memory_space<vmem>>, vector<1x1x1x64xf32>
    %194 = vector.shape_cast %193 : vector<1x1x1x64xf32> to vector<1x1x64xf32>
    %195 = vector.broadcast %194 : vector<1x1x64xf32> to vector<2x7x64xf32>
    %196 = arith.mulf %192, %195 : vector<2x7x64xf32>
    %c23_242 = arith.constant 23 : index
    %c0_243 = arith.constant 0 : index
    %c0_244 = arith.constant 0 : index
    %c0_245 = arith.constant 0 : index
    %197 = vector.load %arg4[%c23_242, %c0_243, %c0_244, %c0_245] : memref<27x2x7x64xf32, #tpu.memory_space<vmem>>, vector<1x2x7x64xf32>
    %198 = vector.shape_cast %197 : vector<1x2x7x64xf32> to vector<2x7x64xf32>
    %199 = vector.shape_cast %196 : vector<2x7x64xf32> to vector<1x2x7x64xf32>
    tpu.vector_store %arg4[%c23_242, %c0_243, %c0_244, %c0_245], %199 {strides = array<i32>} : memref<27x2x7x64xf32, #tpu.memory_space<vmem>>, vector<1x2x7x64xf32>,
    %c0_246 = arith.constant 0 : index
    %c0_247 = arith.constant 0 : index
    %c40 = arith.constant 40 : index
    %200 = vector.load %arg5[%c0_246, %c0_247, %c40] : memref<2x7x106xf32, #tpu.memory_space<vmem>>, vector<2x7x64xf32>
    %c24_248 = arith.constant 24 : index
    %c0_249 = arith.constant 0 : index
    %c0_250 = arith.constant 0 : index
    %c0_251 = arith.constant 0 : index
    %201 = vector.load %arg3[%c24_248, %c0_249, %c0_250, %c0_251] : memref<27x1x1x64xf32, #tpu.memory_space<vmem>>, vector<1x1x1x64xf32>
    %202 = vector.shape_cast %201 : vector<1x1x1x64xf32> to vector<1x1x64xf32>
    %203 = vector.broadcast %202 : vector<1x1x64xf32> to vector<2x7x64xf32>
    %204 = arith.mulf %200, %203 : vector<2x7x64xf32>
    %c24_252 = arith.constant 24 : index
    %c0_253 = arith.constant 0 : index
    %c0_254 = arith.constant 0 : index
    %c0_255 = arith.constant 0 : index
    %205 = vector.load %arg4[%c24_252, %c0_253, %c0_254, %c0_255] : memref<27x2x7x64xf32, #tpu.memory_space<vmem>>, vector<1x2x7x64xf32>
    %206 = vector.shape_cast %205 : vector<1x2x7x64xf32> to vector<2x7x64xf32>
    %207 = vector.shape_cast %204 : vector<2x7x64xf32> to vector<1x2x7x64xf32>
    tpu.vector_store %arg4[%c24_252, %c0_253, %c0_254, %c0_255], %207 {strides = array<i32>} : memref<27x2x7x64xf32, #tpu.memory_space<vmem>>, vector<1x2x7x64xf32>,
    %c0_256 = arith.constant 0 : index
    %c0_257 = arith.constant 0 : index
    %c41 = arith.constant 41 : index
    %208 = vector.load %arg5[%c0_256, %c0_257, %c41] : memref<2x7x106xf32, #tpu.memory_space<vmem>>, vector<2x7x64xf32>
    %c25_258 = arith.constant 25 : index
    %c0_259 = arith.constant 0 : index
    %c0_260 = arith.constant 0 : index
    %c0_261 = arith.constant 0 : index
    %209 = vector.load %arg3[%c25_258, %c0_259, %c0_260, %c0_261] : memref<27x1x1x64xf32, #tpu.memory_space<vmem>>, vector<1x1x1x64xf32>
    %210 = vector.shape_cast %209 : vector<1x1x1x64xf32> to vector<1x1x64xf32>
    %211 = vector.broadcast %210 : vector<1x1x64xf32> to vector<2x7x64xf32>
    %212 = arith.mulf %208, %211 : vector<2x7x64xf32>
    %c25_262 = arith.constant 25 : index
    %c0_263 = arith.constant 0 : index
    %c0_264 = arith.constant 0 : index
    %c0_265 = arith.constant 0 : index
    %213 = vector.load %arg4[%c25_262, %c0_263, %c0_264, %c0_265] : memref<27x2x7x64xf32, #tpu.memory_space<vmem>>, vector<1x2x7x64xf32>
    %214 = vector.shape_cast %213 : vector<1x2x7x64xf32> to vector<2x7x64xf32>
    %215 = vector.shape_cast %212 : vector<2x7x64xf32> to vector<1x2x7x64xf32>
    tpu.vector_store %arg4[%c25_262, %c0_263, %c0_264, %c0_265], %215 {strides = array<i32>} : memref<27x2x7x64xf32, #tpu.memory_space<vmem>>, vector<1x2x7x64xf32>,
    %c0_266 = arith.constant 0 : index
    %c0_267 = arith.constant 0 : index
    %c42 = arith.constant 42 : index
    %216 = vector.load %arg5[%c0_266, %c0_267, %c42] : memref<2x7x106xf32, #tpu.memory_space<vmem>>, vector<2x7x64xf32>
    %c26_268 = arith.constant 26 : index
    %c0_269 = arith.constant 0 : index
    %c0_270 = arith.constant 0 : index
    %c0_271 = arith.constant 0 : index
    %217 = vector.load %arg3[%c26_268, %c0_269, %c0_270, %c0_271] : memref<27x1x1x64xf32, #tpu.memory_space<vmem>>, vector<1x1x1x64xf32>
    %218 = vector.shape_cast %217 : vector<1x1x1x64xf32> to vector<1x1x64xf32>
    %219 = vector.broadcast %218 : vector<1x1x64xf32> to vector<2x7x64xf32>
    %220 = arith.mulf %216, %219 : vector<2x7x64xf32>
    %c26_272 = arith.constant 26 : index
    %c0_273 = arith.constant 0 : index
    %c0_274 = arith.constant 0 : index
    %c0_275 = arith.constant 0 : index
    %221 = vector.load %arg4[%c26_272, %c0_273, %c0_274, %c0_275] : memref<27x2x7x64xf32, #tpu.memory_space<vmem>>, vector<1x2x7x64xf32>
    %222 = vector.shape_cast %221 : vector<1x2x7x64xf32> to vector<2x7x64xf32>
    %223 = vector.shape_cast %220 : vector<2x7x64xf32> to vector<1x2x7x64xf32>
    tpu.vector_store %arg4[%c26_272, %c0_273, %c0_274, %c0_275], %223 {strides = array<i32>} : memref<27x2x7x64xf32, #tpu.memory_space<vmem>>, vector<1x2x7x64xf32>,
    return
  }
  func.func @transform_0(%arg0: i32) -> (i32, i32, i32) {
    %c0_i32 = arith.constant 0 : i32
    %c0_i32_0 = arith.constant 0 : i32
    %c0_i32_1 = arith.constant 0 : i32
    %c0_i32_2 = arith.constant 0 : i32
    return %c0_i32, %c0_i32_0, %c0_i32_1 : i32, i32, i32
  }
  func.func @transform_1(%arg0: i32) -> (i32, i32, i32) {
    %c0_i32 = arith.constant 0 : i32
    %c0_i32_0 = arith.constant 0 : i32
    %c0_i32_1 = arith.constant 0 : i32
    %c0_i32_2 = arith.constant 0 : i32
    return %c0_i32, %c0_i32_0, %c0_i32_1 : i32, i32, i32
  }
  func.func @transform_2(%arg0: i32) -> (i32, i32, i32, i32) {
    %c0_i32 = arith.constant 0 : i32
    %c0_i32_0 = arith.constant 0 : i32
    %c0_i32_1 = arith.constant 0 : i32
    %c0_i32_2 = arith.constant 0 : i32
    %c0_i32_3 = arith.constant 0 : i32
    return %c0_i32, %c0_i32_0, %c0_i32_1, %c0_i32_2 : i32, i32, i32, i32
  }
  func.func @transform_3(%arg0: i32) -> (i32, i32, i32, i32) {
    %c0_i32 = arith.constant 0 : i32
    %c0_i32_0 = arith.constant 0 : i32
    %c0_i32_1 = arith.constant 0 : i32
    %c0_i32_2 = arith.constant 0 : i32
    %c0_i32_3 = arith.constant 0 : i32
    return %c0_i32, %c0_i32_0, %c0_i32_1, %c0_i32_2 : i32, i32, i32, i32
  }
}

</mosaic_0001>

<bundles_post_ra>
// kernel: generator_prep.1
= control target key start
LH: loop header
LB: loop body
LE: loop exit
PB: predicated region body
PF: predicated region fallthrough
CT: control target
= control target key end

     0   :  { %v793_v0 = vmov 0   ;;  %s794_s16 = smov 21   ;;  %s795_s21 = smov 1   ;;  %vm14_vm0 = vcmask 866304   ;;  %v805_v15 = vmov 0.0   ;;  %vm42_vm1 = vcmask 690344   ;;  %s1189_s1 = inlined_call_operand.vmem [shape: f32[2,3,1], index: 1, kind: input, shape index: {}]   ;;  %s1190_s0 = inlined_call_operand.vmem [shape: f32[2,4,64], index: 0, kind: input, shape index: {}]   ;;  %s1191_s2 = inlined_call_operand.vmem [shape: f32[27,1,1,64], index: 2, kind: input, shape index: {}]   ;;  %s1192_s3 = inlined_call_operand.vmem [shape: f32[27,2,7,64], index: 3, kind: output, shape index: {}]  }
   0x1   :  { %764 = vset.pattern.permute.xlu1 %v793_v0  ;;  %v30_v1 = vld [vmem:[%s1189_s1] sm:$0x7]  ;;  %765 = vset.pattern.permute.xlu0 %v793_v0  ;;  %v31_v4 = vld [vmem:[%s1189_s1 + $0x4] sm:$0x7]  ;;  %s796_s26 = smov 2   ;;  %s797_s1 = smov 4  }
   0x2   :  { %v17_v2 = vld [vmem:[%s1190_s0] sm:$0xf]  ;;  %34 = vperm.xlu1 %764, %v30_v1   ;;  %v18_v5 = vld [vmem:[%s1190_s0 + $0x4] sm:$0xf]  ;;  %s798_s0 = smov 5   ;;  %s799_s6 = smov 6  }
   0x3   :  { %21 = vrot.lane.b32.xlu0 %v17_v2, %s794_s16  ;;  %v768_v3 = vld [vmem:[%s1191_s2 + $0x1] ss:$0 sm:$0xff]  ;;  %v766_v6 = vld [vmem:[%s1191_s2 + $0x2] ss:$0 sm:$0xff]  ;;  %v767_v7 = vld [vmem:[%s1191_s2 + $0x3] ss:$0 sm:$0xff] }
   0x4   :  { %62 = vrot.lane.b32.xlu2 %v768_v3, %s795_s21  ;;  %v769_v8 = vld [vmem:[%s1191_s2 + $0x4] ss:$0 sm:$0xff]  ;;  %v770_v9 = vld [vmem:[%s1191_s2 + $0x5] ss:$0 sm:$0xff]  ;;  %v771_v10 = vld [vmem:[%s1191_s2 + $0x6] ss:$0 sm:$0xff] }
   0x5   :  { %s800_s9 = smov 8   ;;  %v772_v11 = vld [vmem:[%s1191_s2 + $0x7] ss:$0 sm:$0xff]  ;;  %s801_s12 = smov 9   ;;  %v773_v12 = vld [vmem:[%s1191_s2 + $0x8] ss:$0 sm:$0xff] }
   0x6   :  { %s802_s15 = smov 10   ;;  %v774_v13 = vld [vmem:[%s1191_s2 + $0x9] ss:$0 sm:$0xff]  ;;  %s803_s19 = smov 16   ;;  %v775_v14 = vld [vmem:[%s1191_s2 + $0xa] ss:$0 sm:$0xff] }
   0x7   :  { %s804_s22 = smov 17   ;;  %15 = vst.msk [vmem:[#allocation2] sm:$0x7f] %vm14_vm0, %v805_v15  ;;  %v776_v16 = vld [vmem:[%s1191_s2 + $0xb] ss:$0 sm:$0xff]  ;;  %s806_s25 = smov 18  }
   0x8   :  { %16 = vst.msk [vmem:[#allocation2 + $0x8] sm:$0x7f] %vm14_vm0, %v805_v15  ;;  %v777_v17 = vld [vmem:[%s1191_s2 + $0xc] ss:$0 sm:$0xff]  ;;  %s807_s28 = smov 20   ;;  %s808_s4 = smov 22  }
   0x9   :  { %v778_v18 = vld [vmem:[%s1191_s2 + $0xd] ss:$0 sm:$0xff]  ;;  %v779_v19 = vld [vmem:[%s1191_s2 + $0xe] ss:$0 sm:$0xff]  ;;  %vm27_vm2 = vcmask 691368   ;;  %s809_s8 = smov 24  }
   0xa   :  { %39 = vperm.xlu1 %764, %v31_v4   ;;  %v781_v22 = vld [vmem:[%s1191_s2 + $0xf] ss:$0 sm:$0xff]  ;;  %v780_v23 = vld [vmem:[%s1191_s2] ss:$0 sm:$0xff]  ;;  %vm53_vm3 = vcmask 522240   ;;  %s810_s13 = smov 127  }
   0xb   :  { %23 = vrot.lane.b32.xlu0 %v18_v5, %s794_s16  ;;  %v782_v31 = vld [vmem:[%s1191_s2 + $0x10] ss:$0 sm:$0xff]  ;;  %s811_s14 = smov 25   ;;  %v783_v39 = vld [vmem:[%s1191_s2 + $0x11] ss:$0 sm:$0xff]  ;;  %s812_s20 = smov 126  }
   0xc   :  { %s813_s21 = smov 26   ;;  %v784_v45 = vld [vmem:[%s1191_s2 + $0x12] ss:$0 sm:$0xff]  ;;  %s814_s24 = smov 124   ;;  %v785_v51 = vld [vmem:[%s1191_s2 + $0x15] ss:$0 sm:$0xff] }
   0xd   :  { %v786_v57 = vld [vmem:[%s1191_s2 + $0x18] ss:$0 sm:$0xff]  ;;  %s820_s5 = smov 120   ;;  %s822_s7 = smov 118  }
   0xe   :  { %s826_s10 = smov 108   ;;  %s828_s17 = smov 106  }
   0xf   :  { %s830_s23 = smov 103   ;;  %s837_s27 = smov 38  }
  0x10   :  { %s840_s11 = smov 92  }
  0x12   :  { %84 = vrot.lane.b32.xlu1 %v766_v6, %s796_s26  ;;  %s836_s26 = smov 41  }
  0x1a   :  { %106 = vrot.lane.b32.xlu1 %v767_v7, %s797_s1  ;;  %s817_s1 = smov 36  }
  0x22   :  { %128 = vrot.lane.b32.xlu1 %v769_v8, %s798_s0  ;;  %s818_s0 = smov 122  }
  0x2a   :  { %150 = vrot.lane.b32.xlu1 %v770_v9, %s799_s6  ;;  %s821_s6 = smov 119  }
  0x32   :  { %172 = vrot.lane.b32.xlu1 %v771_v10, %s800_s9  ;;  %s825_s9 = smov 110  }
  0x3a   :  { %194 = vrot.lane.b32.xlu1 %v772_v11, %s801_s12 }
  0x42   :  { %216 = vrot.lane.b32.xlu1 %v773_v12, %s802_s15  ;;  %s834_s15 = smov 37  }
  0x4a   :  { %238 = vrot.lane.b32.xlu1 %v774_v13, %s803_s19 }
  0x52   :  { %260 = vrot.lane.b32.xlu1 %v775_v14, %s804_s22  ;;  %s842_s22 = smov 88  }
  0x5a   :  { %282 = vrot.lane.b32.xlu1 %v776_v16, %s806_s25  ;;  %s815_s25 = smov 32  }
  0x5e   :  { %v63_v24 = vpop.permute.xlu2 %62 }
  0x62   :  { %304 = vrot.lane.b32.xlu1 %v777_v17, %s807_s28  ;;  %s816_s28 = smov 123  }
  0x6a   :  { %326 = vrot.lane.b32.xlu1 %v778_v18, %s794_s16  ;;  %s823_s16 = smov 112  }
  0x72   :  { %348 = vrot.lane.b32.xlu1 %v779_v19, %s808_s4  ;;  %s819_s4 = smov 40  }
  0x74   :  { %v35_v20 = vpop.permute.xlu1 %34 }
  0x75   :  { %v22_v21 = vpop.permute.xlu0 %21  ;;  %43 = vst.msk [vmem:[#allocation2 + $0x4] sm:$0x7] %vm42_vm1, %v35_v20 }
  0x76   :  { %28 = vst.msk [vmem:[#allocation2] sm:$0xf] %vm27_vm2, %v22_v21 }
  0x7a   :  { %370 = vrot.lane.b32.xlu1 %v781_v22, %s809_s8  ;;  %s824_s8 = smov 111  }
  0x7c   :  { %v40_v25 = vpop.permute.xlu1 %39 }
  0x7d   :  { %v24_v26 = vpop.permute.xlu0 %23  ;;  %v45_v27 = vld [vmem:[#allocation2] sm:$0x7f]  ;;  %44 = vst.msk [vmem:[#allocation2 + $0xc] sm:$0x7] %vm42_vm1, %v40_v25 }
  0x7e   :  { %v56_v28 = vld [vmem:[#allocation2] sm:$0x7f]  ;;  %v51_v29 = vmul.f32 %v780_v23, %v45_v27  ;;  %29 = vst.msk [vmem:[#allocation2 + $0x8] sm:$0xf] %vm27_vm2, %v24_v26 }
  0x7f   :  { %v65_v30 = vmul.f32 %v63_v24, %v56_v28  ;;  %v78_v33 = vld [vmem:[#allocation2] sm:$0x7f] }
  0x80   :  { %54 = vst.msk [vmem:[%s1192_s3] sm:$0x7f] %vm53_vm3, %v51_v29  ;;  %v100_v42 = vld [vmem:[#allocation2] sm:$0x7f] }
  0x81   :  { %69 = vrot.lane.b32.xlu2 %v65_v30, %s810_s13  ;;  %v122_v47 = vld [vmem:[#allocation2] sm:$0x7f] }
  0x82   :  { %392 = vrot.lane.b32.xlu1 %v782_v31, %s811_s14  ;;  %v144_v53 = vld [vmem:[#allocation2] sm:$0x7f]  ;;  %s841_s14 = smov 91  }
  0x83   :  { %v166_v59 = vld [vmem:[#allocation2] sm:$0x7f] }
  0x84   :  { %v85_v32 = vpop.permute.xlu1 %84  ;;  %v188_v0 = vld [vmem:[#allocation2] sm:$0x7f] }
  0x85   :  { %v46_v34 = vld [vmem:[#allocation2 + $0x8] sm:$0x7f]  ;;  %v87_v35 = vmul.f32 %v85_v32, %v78_v33  ;;  %v210_v5 = vld [vmem:[#allocation2] sm:$0x7f] }
  0x86   :  { %v57_v36 = vld [vmem:[#allocation2 + $0x8] sm:$0x7f]  ;;  %v52_v37 = vmul.f32 %v780_v23, %v46_v34  ;;  %v232_v10 = vld [vmem:[#allocation2] sm:$0x7f] }
  0x87   :  { %v66_v38 = vmul.f32 %v63_v24, %v57_v36  ;;  %v79_v40 = vld [vmem:[#allocation2 + $0x8] sm:$0x7f]  ;;  %v254_v15 = vld [vmem:[#allocation2] sm:$0x7f] }
  0x88   :  { %55 = vst.msk [vmem:[%s1192_s3 + $0x8] sm:$0x7f] %vm53_vm3, %v52_v37  ;;  %v88_v44 = vmul.f32 %v85_v32, %v79_v40  ;;  %v101_v48 = vld [vmem:[#allocation2 + $0x8] sm:$0x7f]  ;;  %v276_v20 = vld [vmem:[#allocation2] sm:$0x7f] }
  0x89   :  { %91 = vrot.lane.b32.xlu2 %v87_v35, %s812_s20  ;;  %71 = vrot.lane.b32.xlu0 %v66_v38, %s810_s13  ;;  %v123_v54 = vld [vmem:[#allocation2 + $0x8] sm:$0x7f]  ;;  %v298_v25 = vld [vmem:[#allocation2] sm:$0x7f]  ;;  %s827_s13 = smov 107  }
  0x8a   :  { %414 = vrot.lane.b32.xlu1 %v783_v39, %s813_s21  ;;  %v145_v60 = vld [vmem:[#allocation2 + $0x8] sm:$0x7f]  ;;  %v320_v31 = vld [vmem:[#allocation2] sm:$0x7f] }
  0x8b   :  { %v167_v1 = vld [vmem:[#allocation2 + $0x8] sm:$0x7f]  ;;  %v342_v37 = vld [vmem:[#allocation2] sm:$0x7f] }
  0x8c   :  { %v107_v41 = vpop.permute.xlu1 %106  ;;  %v189_v6 = vld [vmem:[#allocation2 + $0x8] sm:$0x7f] }
  0x8d   :  { %v109_v43 = vmul.f32 %v107_v41, %v100_v42  ;;  %v110_v50 = vmul.f32 %v107_v41, %v101_v48  ;;  %v211_v11 = vld [vmem:[#allocation2 + $0x8] sm:$0x7f] }
  0x8e   :  { %v233_v16 = vld [vmem:[#allocation2 + $0x8] sm:$0x7f] }
  0x8f   :  { %v255_v21 = vld [vmem:[#allocation2 + $0x8] sm:$0x7f] }
  0x90   :  { %v277_v26 = vld [vmem:[#allocation2 + $0x8] sm:$0x7f] }
  0x91   :  { %113 = vrot.lane.b32.xlu2 %v109_v43, %s814_s24  ;;  %93 = vrot.lane.b32.xlu0 %v88_v44, %s812_s20  ;;  %v299_v32 = vld [vmem:[#allocation2 + $0x8] sm:$0x7f]  ;;  %v364_v43 = vld [vmem:[#allocation2] sm:$0x7f]  ;;  %s829_s20 = smov 104  }
  0x92   :  { %436 = vrot.lane.b32.xlu1 %v784_v45, %s815_s25  ;;  %v321_v38 = vld [vmem:[#allocation2 + $0x8] sm:$0x7f]  ;;  %s845_s25 = smov 90  }
  0x93   :  { %v343_v44 = vld [vmem:[#allocation2 + $0x8] sm:$0x7f] }
  0x94   :  { %v129_v46 = vpop.permute.xlu1 %128 }
  0x95   :  { %v131_v49 = vmul.f32 %v129_v46, %v122_v47  ;;  %v132_v56 = vmul.f32 %v129_v46, %v123_v54 }
  0x99   :  { %135 = vrot.lane.b32.xlu2 %v131_v49, %s816_s28  ;;  %115 = vrot.lane.b32.xlu0 %v110_v50, %s814_s24  ;;  %v386_v49 = vld [vmem:[#allocation2] sm:$0x7f]  ;;  %v365_v50 = vld [vmem:[#allocation2 + $0x8] sm:$0x7f]  ;;  %s844_s24 = smov 94  }
  0x9a   :  { %502 = vrot.lane.b32.xlu1 %v785_v51, %s817_s1 }
  0x9c   :  { %v151_v52 = vpop.permute.xlu1 %150 }
  0x9d   :  { %v153_v55 = vmul.f32 %v151_v52, %v144_v53  ;;  %v154_v62 = vmul.f32 %v151_v52, %v145_v60 }
  0xa1   :  { %157 = vrot.lane.b32.xlu2 %v153_v55, %s818_s0  ;;  %137 = vrot.lane.b32.xlu0 %v132_v56, %s816_s28  ;;  %v408_v56 = vld [vmem:[#allocation2] sm:$0x7f]  ;;  %s831_s28 = smov 102  }
  0xa2   :  { %568 = vrot.lane.b32.xlu1 %v786_v57, %s819_s4  ;;  %v387_v57 = vld [vmem:[#allocation2 + $0x8] sm:$0x7f] }
  0xa4   :  { %v173_v58 = vpop.permute.xlu1 %172 }
  0xa5   :  { %v175_v61 = vmul.f32 %v173_v58, %v166_v59  ;;  %v176_v3 = vmul.f32 %v173_v58, %v167_v1  ;;  %v409_v1 = vld [vmem:[#allocation2 + $0x8] sm:$0x7f] }
  0xa9   :  { %179 = vrot.lane.b32.xlu2 %v175_v61, %s820_s5  ;;  %159 = vrot.lane.b32.xlu0 %v154_v62, %s818_s0  ;;  %v430_v62 = vld [vmem:[#allocation2] sm:$0x7f] }
  0xac   :  { %v195_v63 = vpop.permute.xlu1 %194 }
  0xad   :  { %v197_v2 = vmul.f32 %v195_v63, %v188_v0  ;;  %v198_v8 = vmul.f32 %v195_v63, %v189_v6  ;;  %v787_v0 = vld [vmem:[%s1191_s2 + $0x13] ss:$0 sm:$0xff]  ;;  %v788_v6 = vld [vmem:[%s1191_s2 + $0x16] ss:$0 sm:$0xff] }
  0xb1   :  { %201 = vrot.lane.b32.xlu2 %v197_v2, %s821_s6  ;;  %181 = vrot.lane.b32.xlu0 %v176_v3, %s820_s5  ;;  %s838_s5 = smov 42  }
  0xb4   :  { %v217_v4 = vpop.permute.xlu1 %216 }
  0xb5   :  { %v219_v7 = vmul.f32 %v217_v4, %v210_v5  ;;  %v220_v13 = vmul.f32 %v217_v4, %v211_v11  ;;  %v791_v11 = vld [vmem:[%s1191_s2 + $0x17] ss:$0 sm:$0xff] }
  0xb9   :  { %223 = vrot.lane.b32.xlu2 %v219_v7, %s822_s7  ;;  %203 = vrot.lane.b32.xlu0 %v198_v8, %s821_s6  ;;  %s832_s6 = smov 96   ;;  %v789_v7 = vld [vmem:[%s1191_s2 + $0x14] ss:$0 sm:$0xff] }
  0xbc   :  { %v239_v9 = vpop.permute.xlu1 %238 }
  0xbd   :  { %v241_v12 = vmul.f32 %v239_v9, %v232_v10  ;;  %v242_v18 = vmul.f32 %v239_v9, %v233_v16  ;;  %v790_v10 = vld [vmem:[%s1191_s2 + $0x19] ss:$0 sm:$0xff] }
  0xc1   :  { %245 = vrot.lane.b32.xlu2 %v241_v12, %s823_s16  ;;  %225 = vrot.lane.b32.xlu0 %v220_v13, %s822_s7  ;;  %s833_s7 = smov 33  }
  0xc4   :  { %v261_v14 = vpop.permute.xlu1 %260 }
  0xc5   :  { %v263_v17 = vmul.f32 %v261_v14, %v254_v15  ;;  %v264_v23 = vmul.f32 %v261_v14, %v255_v21  ;;  %v792_v14 = vld [vmem:[%s1191_s2 + $0x1a] ss:$0 sm:$0xff]  ;;  %v431_v15 = vld [vmem:[#allocation2 + $0x8] sm:$0x7f]  ;;  %s839_s2 = smov 95  }
  0xc9   :  { %267 = vrot.lane.b32.xlu2 %v263_v17, %s824_s8  ;;  %247 = vrot.lane.b32.xlu0 %v242_v18, %s823_s16 }
  0xcc   :  { %v283_v19 = vpop.permute.xlu1 %282 }
  0xcd   :  { %v285_v22 = vmul.f32 %v283_v19, %v276_v20  ;;  %v286_v28 = vmul.f32 %v283_v19, %v277_v26 }
  0xd1   :  { %289 = vrot.lane.b32.xlu2 %v285_v22, %s825_s9  ;;  %269 = vrot.lane.b32.xlu0 %v264_v23, %s824_s8 }
  0xd4   :  { %v305_v24 = vpop.permute.xlu1 %304 }
  0xd5   :  { %v307_v27 = vmul.f32 %v305_v24, %v298_v25  ;;  %v308_v34 = vmul.f32 %v305_v24, %v299_v32 }
  0xd9   :  { %311 = vrot.lane.b32.xlu2 %v307_v27, %s826_s10  ;;  %291 = vrot.lane.b32.xlu0 %v286_v28, %s825_s9 }
  0xdb   :  { %v70_v29 = vpop.permute.xlu2 %69 }
  0xdc   :  { %633 = vst.msk [vmem:[%s1192_s3 + $0x10] sm:$0x7f] %vm53_vm3, %v70_v29  ;;  %v327_v30 = vpop.permute.xlu1 %326 }
  0xdd   :  { %v329_v33 = vmul.f32 %v327_v30, %v320_v31  ;;  %v330_v40 = vmul.f32 %v327_v30, %v321_v38 }
  0xe1   :  { %333 = vrot.lane.b32.xlu2 %v329_v33, %s827_s13  ;;  %313 = vrot.lane.b32.xlu0 %v308_v34, %s826_s10  ;;  %v452_v33 = vld [vmem:[#allocation2] sm:$0x7f] }
  0xe3   :  { %v92_v35 = vpop.permute.xlu2 %91 }
  0xe4   :  { %636 = vst.msk [vmem:[%s1192_s3 + $0x20] sm:$0x7f] %vm53_vm3, %v92_v35  ;;  %v349_v36 = vpop.permute.xlu1 %348  ;;  %v453_v35 = vld [vmem:[#allocation2 + $0x8] sm:$0x7f] }
  0xe5   :  { %v351_v39 = vmul.f32 %v349_v36, %v342_v37  ;;  %v352_v46 = vmul.f32 %v349_v36, %v343_v44 }
  0xe9   :  { %355 = vrot.lane.b32.xlu2 %v351_v39, %s828_s17  ;;  %335 = vrot.lane.b32.xlu0 %v330_v40, %s827_s13  ;;  %v496_v40 = vld [vmem:[#allocation2] sm:$0x7f] }
  0xeb   :  { %v114_v41 = vpop.permute.xlu2 %113 }
  0xec   :  { %639 = vst.msk [vmem:[%s1192_s3 + $0x30] sm:$0x7f] %vm53_vm3, %v114_v41  ;;  %v371_v42 = vpop.permute.xlu1 %370 }
  0xed   :  { %v373_v45 = vmul.f32 %v371_v42, %v364_v43  ;;  %v374_v52 = vmul.f32 %v371_v42, %v365_v50  ;;  %v562_v50 = vld [vmem:[#allocation2] sm:$0x7f] }
  0xf1   :  { %377 = vrot.lane.b32.xlu2 %v373_v45, %s829_s20  ;;  %357 = vrot.lane.b32.xlu0 %v352_v46, %s828_s17  ;;  %s835_s17 = smov 34   ;;  %v519_v45 = vld [vmem:[#allocation2 + $0x8] sm:$0x7f] }
  0xf3   :  { %v136_v47 = vpop.permute.xlu2 %135 }
  0xf4   :  { %642 = vst.msk [vmem:[%s1192_s3 + $0x40] sm:$0x7f] %vm53_vm3, %v136_v47  ;;  %v393_v48 = vpop.permute.xlu1 %392 }
  0xf5   :  { %v395_v51 = vmul.f32 %v393_v48, %v386_v49  ;;  %v396_v59 = vmul.f32 %v393_v48, %v387_v57 }
  0xf9   :  { %399 = vrot.lane.b32.xlu2 %v395_v51, %s830_s23  ;;  %379 = vrot.lane.b32.xlu0 %v374_v52, %s829_s20 }
  0xfb   :  { %v158_v53 = vpop.permute.xlu2 %157  ;;  %v72_v54 = vpop.permute.xlu0 %71 }
  0xfc   :  { %645 = vst.msk [vmem:[%s1192_s3 + $0x50] sm:$0x7f] %vm53_vm3, %v158_v53  ;;  %v415_v55 = vpop.permute.xlu1 %414 }
  0xfd   :  { %634 = vst.msk [vmem:[%s1192_s3 + $0x18] sm:$0x7f] %vm53_vm3, %v72_v54  ;;  %v417_v58 = vmul.f32 %v415_v55, %v408_v56  ;;  %v418_v3 = vmul.f32 %v415_v55, %v409_v1  ;;  %v585_v54 = vld [vmem:[#allocation2 + $0x8] sm:$0x7f]  ;;  %v474_v55 = vld [vmem:[#allocation2] sm:$0x7f] }
  0xfe   :  { %v475_v56 = vld [vmem:[#allocation2 + $0x8] sm:$0x7f] }
 0x101   :  { %421 = vrot.lane.b32.xlu2 %v417_v58, %s831_s28  ;;  %401 = vrot.lane.b32.xlu0 %v396_v59, %s830_s23  ;;  %s843_s23 = smov 87  }
 0x103   :  { %v180_v60 = vpop.permute.xlu2 %179  ;;  %v94_v61 = vpop.permute.xlu0 %93 }
 0x104   :  { %648 = vst.msk [vmem:[%s1192_s3 + $0x60] sm:$0x7f] %vm53_vm3, %v180_v60  ;;  %v437_v63 = vpop.permute.xlu1 %436 }
 0x105   :  { %637 = vst.msk [vmem:[%s1192_s3 + $0x28] sm:$0x7f] %vm53_vm3, %v94_v61  ;;  %v439_v2 = vmul.f32 %v437_v63, %v430_v62  ;;  %v440_v16 = vmul.f32 %v437_v63, %v431_v15  ;;  %v518_v61 = vld [vmem:[#allocation2] sm:$0x7f]  ;;  %v497_v62 = vld [vmem:[#allocation2 + $0x8] sm:$0x7f] }
 0x107   :  { %443 = vrot.lane.b32.xlu1 %v439_v2, %s832_s6  ;;  %v541_v2 = vld [vmem:[#allocation2 + $0x8] sm:$0x7f] }
 0x109   :  { %458 = vrot.lane.b32.xlu2 %v787_v0, %s833_s7  ;;  %423 = vrot.lane.b32.xlu0 %v418_v3, %s831_s28  ;;  %v540_v3 = vld [vmem:[#allocation2] sm:$0x7f] }
 0x10b   :  { %v202_v4 = vpop.permute.xlu2 %201  ;;  %v116_v5 = vpop.permute.xlu0 %115 }
 0x10c   :  { %651 = vst.msk [vmem:[%s1192_s3 + $0x70] sm:$0x7f] %vm53_vm3, %v202_v4  ;;  %v503_v39 = vpop.permute.xlu1 %502 }
 0x10d   :  { %640 = vst.msk [vmem:[%s1192_s3 + $0x38] sm:$0x7f] %vm53_vm3, %v116_v5  ;;  %v505_v43 = vmul.f32 %v503_v39, %v496_v40  ;;  %v506_v0 = vmul.f32 %v503_v39, %v497_v62 }
 0x111   :  { %524 = vrot.lane.b32.xlu2 %v788_v6, %s834_s15  ;;  %480 = vrot.lane.b32.xlu0 %v789_v7, %s835_s17  ;;  %v584_v6 = vld [vmem:[#allocation2] sm:$0x7f]  ;;  %v563_v7 = vld [vmem:[#allocation2 + $0x8] sm:$0x7f] }
 0x113   :  { %v224_v8 = vpop.permute.xlu2 %223  ;;  %v138_v9 = vpop.permute.xlu0 %137 }
 0x114   :  { %654 = vst.msk [vmem:[%s1192_s3 + $0x80] sm:$0x7f] %vm53_vm3, %v224_v8  ;;  %v569_v44 = vpop.permute.xlu1 %568 }
 0x115   :  { %643 = vst.msk [vmem:[%s1192_s3 + $0x48] sm:$0x7f] %vm53_vm3, %v138_v9  ;;  %v571_v53 = vmul.f32 %v569_v44, %v562_v50  ;;  %v572_v9 = vmul.f32 %v569_v44, %v563_v7 }
 0x119   :  { %590 = vrot.lane.b32.xlu2 %v790_v10, %s836_s26  ;;  %546 = vrot.lane.b32.xlu0 %v791_v11, %s837_s27  ;;  %v607_v11 = vld [vmem:[#allocation2 + $0x8] sm:$0x7f]  ;;  %s846_s26 = smov 86  }
 0x11b   :  { %v246_v12 = vpop.permute.xlu2 %245  ;;  %v160_v13 = vpop.permute.xlu0 %159 }
 0x11c   :  { %657 = vst.msk [vmem:[%s1192_s3 + $0x90] sm:$0x7f] %vm53_vm3, %v246_v12  ;;  %v606_v12 = vld [vmem:[#allocation2] sm:$0x7f] }
 0x11d   :  { %646 = vst.msk [vmem:[%s1192_s3 + $0x58] sm:$0x7f] %vm53_vm3, %v160_v13 }
 0x121   :  { %445 = vrot.lane.b32.xlu2 %v440_v16, %s832_s6  ;;  %612 = vrot.lane.b32.xlu0 %v792_v14, %s838_s5 }
 0x123   :  { %v268_v17 = vpop.permute.xlu2 %267  ;;  %v182_v18 = vpop.permute.xlu0 %181 }
 0x124   :  { %660 = vst.msk [vmem:[%s1192_s3 + $0xa0] sm:$0x7f] %vm53_vm3, %v268_v17 }
 0x125   :  { %649 = vst.msk [vmem:[%s1192_s3 + $0x68] sm:$0x7f] %vm53_vm3, %v182_v18 }
 0x12b   :  { %v290_v19 = vpop.permute.xlu2 %289  ;;  %v204_v20 = vpop.permute.xlu0 %203 }
 0x12c   :  { %663 = vst.msk [vmem:[%s1192_s3 + $0xb0] sm:$0x7f] %vm53_vm3, %v290_v19 }
 0x12d   :  { %652 = vst.msk [vmem:[%s1192_s3 + $0x78] sm:$0x7f] %vm53_vm3, %v204_v20 }
 0x133   :  { %v312_v21 = vpop.permute.xlu2 %311  ;;  %v226_v22 = vpop.permute.xlu0 %225 }
 0x134   :  { %666 = vst.msk [vmem:[%s1192_s3 + $0xc0] sm:$0x7f] %vm53_vm3, %v312_v21 }
 0x135   :  { %655 = vst.msk [vmem:[%s1192_s3 + $0x88] sm:$0x7f] %vm53_vm3, %v226_v22 }
 0x13b   :  { %v334_v23 = vpop.permute.xlu2 %333  ;;  %v248_v24 = vpop.permute.xlu0 %247 }
 0x13c   :  { %669 = vst.msk [vmem:[%s1192_s3 + $0xd0] sm:$0x7f] %vm53_vm3, %v334_v23 }
 0x13d   :  { %658 = vst.msk [vmem:[%s1192_s3 + $0x98] sm:$0x7f] %vm53_vm3, %v248_v24 }
 0x143   :  { %v356_v25 = vpop.permute.xlu2 %355  ;;  %v270_v26 = vpop.permute.xlu0 %269 }
 0x144   :  { %672 = vst.msk [vmem:[%s1192_s3 + $0xe0] sm:$0x7f] %vm53_vm3, %v356_v25 }
 0x145   :  { %661 = vst.msk [vmem:[%s1192_s3 + $0xa8] sm:$0x7f] %vm53_vm3, %v270_v26 }
 0x14b   :  { %v378_v27 = vpop.permute.xlu2 %377  ;;  %v292_v28 = vpop.permute.xlu0 %291 }
 0x14c   :  { %675 = vst.msk [vmem:[%s1192_s3 + $0xf0] sm:$0x7f] %vm53_vm3, %v378_v27 }
 0x14d   :  { %664 = vst.msk [vmem:[%s1192_s3 + $0xb8] sm:$0x7f] %vm53_vm3, %v292_v28 }
 0x153   :  { %v400_v29 = vpop.permute.xlu2 %399  ;;  %v314_v30 = vpop.permute.xlu0 %313 }
 0x154   :  { %678 = vst.msk [vmem:[%s1192_s3 + $0x100] sm:$0x7f] %vm53_vm3, %v400_v29 }
 0x155   :  { %667 = vst.msk [vmem:[%s1192_s3 + $0xc8] sm:$0x7f] %vm53_vm3, %v314_v30 }
 0x15b   :  { %v422_v31 = vpop.permute.xlu2 %421  ;;  %v336_v32 = vpop.permute.xlu0 %335 }
 0x15c   :  { %681 = vst.msk [vmem:[%s1192_s3 + $0x110] sm:$0x7f] %vm53_vm3, %v422_v31 }
 0x15d   :  { %670 = vst.msk [vmem:[%s1192_s3 + $0xd8] sm:$0x7f] %vm53_vm3, %v336_v32 }
 0x163   :  { %v459_v34 = vpop.permute.xlu2 %458  ;;  %v358_v36 = vpop.permute.xlu0 %357 }
 0x164   :  { %v461_v37 = vmul.f32 %v459_v34, %v452_v33  ;;  %v462_v38 = vmul.f32 %v459_v34, %v453_v35  ;;  %673 = vst.msk [vmem:[%s1192_s3 + $0xe8] sm:$0x7f] %vm53_vm3, %v358_v36 }
 0x166   :  { %467 = vrot.lane.b32.xlu1 %v462_v38, %s839_s2  ;;  %465 = vrot.lane.b32.xlu0 %v461_v37, %s839_s2 }
 0x16b   :  { %v525_v41 = vpop.permute.xlu2 %524  ;;  %v380_v42 = vpop.permute.xlu0 %379 }
 0x16c   :  { %676 = vst.msk [vmem:[%s1192_s3 + $0xf8] sm:$0x7f] %vm53_vm3, %v380_v42  ;;  %v528_v48 = vmul.f32 %v525_v41, %v519_v45  ;;  %v527_v63 = vmul.f32 %v525_v41, %v518_v61 }
 0x16e   :  { %509 = vrot.lane.b32.xlu1 %v505_v43, %s840_s11 }
 0x173   :  { %v591_v46 = vpop.permute.xlu2 %590  ;;  %v402_v47 = vpop.permute.xlu0 %401 }
 0x174   :  { %679 = vst.msk [vmem:[%s1192_s3 + $0x108] sm:$0x7f] %vm53_vm3, %v402_v47  ;;  %v594_v58 = vmul.f32 %v591_v46, %v585_v54  ;;  %v593_v8 = vmul.f32 %v591_v46, %v584_v6 }
 0x176   :  { %533 = vrot.lane.b32.xlu1 %v528_v48, %s841_s14 }
 0x179   :  { %v444_v49 = vpop.permute.xlu1 %443 }
 0x17a   :  { %684 = vst.msk [vmem:[%s1192_s3 + $0x120] sm:$0x7f] %vm53_vm3, %v444_v49 }
 0x17b   :  { %v446_v51 = vpop.permute.xlu2 %445  ;;  %v424_v52 = vpop.permute.xlu0 %423 }
 0x17c   :  { %685 = vst.msk [vmem:[%s1192_s3 + $0x128] sm:$0x7f] %vm53_vm3, %v446_v51 }
 0x17d   :  { %682 = vst.msk [vmem:[%s1192_s3 + $0x118] sm:$0x7f] %vm53_vm3, %v424_v52 }
 0x17e   :  { %575 = vrot.lane.b32.xlu1 %v571_v53, %s842_s22 }
 0x183   :  { %v481_v57 = vpop.permute.xlu0 %480 }
 0x184   :  { %v483_v59 = vmul.f32 %v481_v57, %v474_v55  ;;  %v484_v60 = vmul.f32 %v481_v57, %v475_v56 }
 0x186   :  { %599 = vrot.lane.b32.xlu1 %v594_v58, %s843_s23  ;;  %489 = vrot.lane.b32.xlu0 %v484_v60, %s844_s24 }
 0x187   :  { %487 = vrot.lane.b32.xlu2 %v483_v59, %s844_s24 }
 0x18b   :  { %v547_v1 = vpop.permute.xlu0 %546 }
 0x18c   :  { %v550_v4 = vmul.f32 %v547_v1, %v541_v2  ;;  %v549_v5 = vmul.f32 %v547_v1, %v540_v3 }
 0x18e   :  { %531 = vrot.lane.b32.xlu0 %v527_v63, %s841_s14 }
 0x18f   :  { %511 = vrot.lane.b32.xlu2 %v506_v0, %s840_s11 }
 0x193   :  { %v613_v10 = vpop.permute.xlu0 %612 }
 0x194   :  { %v616_v13 = vmul.f32 %v613_v10, %v607_v11  ;;  %v615_v14 = vmul.f32 %v613_v10, %v606_v12 }
 0x196   :  { %555 = vrot.lane.b32.xlu0 %v550_v4, %s845_s25 }
 0x197   :  { %553 = vrot.lane.b32.xlu2 %v549_v5, %s845_s25 }
 0x19e   :  { %597 = vrot.lane.b32.xlu0 %v593_v8, %s843_s23 }
 0x19f   :  { %577 = vrot.lane.b32.xlu2 %v572_v9, %s842_s22 }
 0x1a6   :  { %621 = vrot.lane.b32.xlu0 %v616_v13, %s846_s26 }
 0x1a7   :  { %619 = vrot.lane.b32.xlu2 %v615_v14, %s846_s26 }
 0x1d8   :  { %v468_v15 = vpop.permute.xlu1 %467  ;;  %v466_v16 = vpop.permute.xlu0 %465 }
 0x1d9   :  { %688 = vst.msk [vmem:[%s1192_s3 + $0x138] sm:$0x7f] %vm53_vm3, %v468_v15 }
 0x1da   :  { %687 = vst.msk [vmem:[%s1192_s3 + $0x130] sm:$0x7f] %vm53_vm3, %v466_v16 }
 0x1e0   :  { %v510_v17 = vpop.permute.xlu1 %509 }
 0x1e1   :  { %693 = vst.msk [vmem:[%s1192_s3 + $0x150] sm:$0x7f] %vm53_vm3, %v510_v17  ;;  %v488_v18 = vpop.permute.xlu2 %487 }
 0x1e2   :  { %690 = vst.msk [vmem:[%s1192_s3 + $0x140] sm:$0x7f] %vm53_vm3, %v488_v18 }
 0x1e8   :  { %v534_v19 = vpop.permute.xlu1 %533 }
 0x1e9   :  { %697 = vst.msk [vmem:[%s1192_s3 + $0x168] sm:$0x7f] %vm53_vm3, %v534_v19  ;;  %v512_v20 = vpop.permute.xlu2 %511 }
 0x1ea   :  { %694 = vst.msk [vmem:[%s1192_s3 + $0x158] sm:$0x7f] %vm53_vm3, %v512_v20 }
 0x1f0   :  { %v576_v21 = vpop.permute.xlu1 %575 }
 0x1f1   :  { %702 = vst.msk [vmem:[%s1192_s3 + $0x180] sm:$0x7f] %vm53_vm3, %v576_v21  ;;  %v554_v22 = vpop.permute.xlu2 %553 }
 0x1f2   :  { %699 = vst.msk [vmem:[%s1192_s3 + $0x170] sm:$0x7f] %vm53_vm3, %v554_v22 }
 0x1f8   :  { %v600_v23 = vpop.permute.xlu1 %599  ;;  %v490_v24 = vpop.permute.xlu0 %489 }
 0x1f9   :  { %706 = vst.msk [vmem:[%s1192_s3 + $0x198] sm:$0x7f] %vm53_vm3, %v600_v23  ;;  %v578_v25 = vpop.permute.xlu2 %577 }
 0x1fa   :  { %703 = vst.msk [vmem:[%s1192_s3 + $0x188] sm:$0x7f] %vm53_vm3, %v578_v25 }
 0x1fb   :  { %691 = vst.msk [vmem:[%s1192_s3 + $0x148] sm:$0x7f] %vm53_vm3, %v490_v24 }
 0x200   :  { %v532_v26 = vpop.permute.xlu0 %531 }
 0x201   :  { %v620_v27 = vpop.permute.xlu2 %619  ;;  %696 = vst.msk [vmem:[%s1192_s3 + $0x160] sm:$0x7f] %vm53_vm3, %v532_v26 }
 0x202   :  { %708 = vst.msk [vmem:[%s1192_s3 + $0x1a0] sm:$0x7f] %vm53_vm3, %v620_v27 }
 0x208   :  { %v556_v28 = vpop.permute.xlu0 %555 }
 0x209   :  { %700 = vst.msk [vmem:[%s1192_s3 + $0x178] sm:$0x7f] %vm53_vm3, %v556_v28 }
 0x210   :  { %v598_v29 = vpop.permute.xlu0 %597 }
 0x211   :  { %705 = vst.msk [vmem:[%s1192_s3 + $0x190] sm:$0x7f] %vm53_vm3, %v598_v29 }
 0x218   :  { %v622_v30 = vpop.permute.xlu0 %621 }
 0x219   :  { %709 = vst.msk [vmem:[%s1192_s3 + $0x1a8] sm:$0x7f] %vm53_vm3, %v622_v30 }

</bundles_post_ra>
